<compile_context>
chip_gen: v7x
topology: tpu7x:2x2x1
jax: 0.10.0
libtpu: 0.0.40
codegen_flags: <defaults>
</compile_context>

<pallas_src>
import math
import functools

import jax
import jax.numpy as jnp
from jax.experimental import pallas as pl
from jax.experimental.pallas import tpu as pltpu

LANE = 128


# ----------------------------------------------------------------------------
# Shape bookkeeping -- mirrors SignalAutoEncoder.__init__ exactly.
# ----------------------------------------------------------------------------
def autoencoder_layer_sizes(nsize, latent_size, deepness):
    factor = (nsize / latent_size) ** (1.0 / deepness)
    enc = []
    for i in range(deepness - 1):
        in_size = int(round(nsize / factor ** i))
        out_size = int(round(nsize / factor ** (i + 1)))
        enc.append((in_size, out_size))
    enc.append((int(round(nsize / factor ** (deepness - 1))), latent_size))
    dec = []
    for i in range(deepness - 1):
        in_size = int(round(latent_size * factor ** i))
        out_size = int(round(latent_size * factor ** (i + 1)))
        dec.append((in_size, out_size))
    dec.append((int(round(latent_size * factor ** (deepness - 1))), nsize))
    return enc, dec


def init_params(key, enc_sizes, dec_sizes, dtype=jnp.float32):
    """Deterministic PyTorch-style Linear init: U(-1/sqrt(fan_in), 1/sqrt(fan_in))."""
    params = []
    for (fan_in, fan_out) in enc_sizes + dec_sizes:
        key, kw, kb = jax.random.split(key, 3)
        bound = 1.0 / math.sqrt(fan_in)
        w = jax.random.uniform(kw, (fan_in, fan_out), dtype, -bound, bound)
        b = jax.random.uniform(kb, (1, fan_out), dtype, -bound, bound)
        params.append((w, b))
    return params


def _round_up(n, m):
    return ((n + m - 1) // m) * m


# ----------------------------------------------------------------------------
# Fused kernel: all encoder + decoder layers on one batch tile.
#   Matmuls: bf16 operands, f32 accumulation (MXU).
#   Bias add / ReLU: f32 (VPU; portable to v5e which has no bf16 VALU).
# ----------------------------------------------------------------------------
def _ae_kernel(n_enc, n_dec, latent, *refs):
    x_ref = refs[0]
    param_refs = refs[1:1 + 2 * (n_enc + n_dec)]
    xr_ref, z_ref = refs[-2], refs[-1]

    h = x_ref[...]                          # bf16 (tb, nsize_pad), lane-dense
    idx = 0

    # Encoder: (Linear, ReLU) * (deepness-1), then final Linear (no ReLU).
    for li in range(n_enc):
        w = param_refs[idx][...]            # bf16 (in_pad, out_pad), VMEM-resident
        b = param_refs[idx + 1][...]        # f32  (1, out_pad), broadcasts over sublanes
        idx += 2
        a = jnp.dot(h, w, preferred_element_type=jnp.float32) + b
        if li < n_enc - 1:
            a = jnp.maximum(a, 0.0)
        h = a.astype(jnp.bfloat16)          # bf16 operand for the next MXU pass
    # Latent written at its true width (tiny -> no padded-writeback waste).
    z_ref[...] = h[:, :latent]

    # Decoder: (Linear, ReLU) * (deepness-1), then final Linear (no ReLU).
    for li in range(n_dec):
        w = param_refs[idx][...]
        b = param_refs[idx + 1][...]
        idx += 2
        a = jnp.dot(h, w, preferred_element_type=jnp.float32) + b
        if li < n_dec - 1:
            a = jnp.maximum(a, 0.0)
        h = a.astype(jnp.bfloat16)
    xr_ref[...] = h                         # (tb, nsize_pad) bf16: unmasked 128-lane stores


def signal_autoencoder_forward(x, params, enc_sizes, dec_sizes, *, batch_tile=1024):
    """Returns (x_reconstructed, z) exactly like SignalAutoEncoder.forward."""
    n_enc, n_dec = len(enc_sizes), len(dec_sizes)
    batch, nsize = x.shape
    latent = enc_sizes[-1][1]
    nsize_p = _round_up(nsize, LANE)

    # --- pad every layer's feature dims to multiples of 128 and cast W to bf16.
    # Zero-padded rows/cols/bias keep the math exact (padded lanes stay zero).
    padded = []
    for (fan_in, fan_out), (w, b) in zip(enc_sizes + dec_sizes, params):
        in_p, out_p = _round_up(fan_in, LANE), _round_up(fan_out, LANE)
        w = jnp.pad(w, ((0, in_p - fan_in), (0, out_p - fan_out))).astype(jnp.bfloat16)
        b = jnp.pad(b, ((0, 0), (0, out_p - fan_out))).astype(jnp.float32)
        padded.append((w, b))
    flat_params = [p for wb in padded for p in wb]

    # --- batch tiling: tiles as big as possible (overhead-bound kernel) while
    # keeping >= 2 grid steps when batch allows, so v7x's two TensorCores both
    # get work under dimension_semantics=("parallel",).
    tb = max(8, min(batch_tile, _round_up(-(-batch // 2), 8)))
    batch_p = _round_up(batch, tb)
    grid = (batch_p // tb,)

    # --- lane-dense bf16 input stream (pads are zero; first W's padded rows too).
    x_in = jnp.pad(x, ((0, batch_p - batch), (0, nsize_p - nsize))).astype(jnp.bfloat16)

    def resident(p):
        # Full-array block whose block index never changes -> stays in VMEM.
        return pl.BlockSpec(p.shape, lambda i: (0, 0))

    in_specs = [pl.BlockSpec((tb, nsize_p), lambda i: (i, 0))]
    in_specs += [resident(p) for p in flat_params]
    out_specs = (
        pl.BlockSpec((tb, nsize_p), lambda i: (i, 0)),   # x_rec: lane-dense bf16
        pl.BlockSpec((tb, latent), lambda i: (i, 0)),    # z: true width, bf16
    )
    out_shape = (
        jax.ShapeDtypeStruct((batch_p, nsize_p), jnp.bfloat16),
        jax.ShapeDtypeStruct((batch_p, latent), jnp.bfloat16),
    )

    # --- scheduling hint + explicit VMEM budget (fits v7x's 64 MiB) ---
    param_bytes = sum(p.size * p.dtype.itemsize for p in flat_params)
    flops = 2 * batch_p * sum(w.size for (w, _) in padded)
    io_bytes = param_bytes + batch_p * 2 * (nsize_p + nsize_p + latent)
    cost = pl.CostEstimate(flops=flops, transcendentals=0, bytes_accessed=io_bytes)

    max_feat = max(w.shape[1] for (w, _) in padded)
    tile_io = tb * 2 * (nsize_p + nsize_p + latent)   # bf16 in + out tiles (per buffer)
    act_bytes = 4 * tb * max_feat * 4                 # a few live f32 intermediates
    vmem_limit = int(min(param_bytes + 2 * tile_io + act_bytes + (8 << 20), 48 << 20))

    kernel = functools.partial(_ae_kernel, n_enc, n_dec, latent)
    xr_p, z_p = pl.pallas_call(
        kernel,
        out_shape=out_shape,
        grid=grid,
        in_specs=in_specs,
        out_specs=out_specs,
        compiler_params=pltpu.CompilerParams(
            dimension_semantics=("parallel",),   # megacore-shard batch tiles on v7x
            vmem_limit_bytes=vmem_limit,
        ),
        cost_estimate=cost,
    )(x_in, *flat_params)

    # Strip batch / lane padding; return f32 like the original module.
    return (xr_p[:batch, :nsize].astype(jnp.float32),
            z_p[:batch, :latent].astype(jnp.float32))


# ----------------------------------------------------------------------------
# Pure-JAX reference mirroring the kernel's precision
# (bf16 operands / f32 accumulate / f32 bias+ReLU / bf16 between layers).
# ----------------------------------------------------------------------------
def reference_forward(x, params, n_enc, n_dec):
    n_layers = n_enc + n_dec
    h = x.astype(jnp.bfloat16)
    z = None
    for li, (w, b) in enumerate(params):
        a = jnp.dot(h, w.astype(jnp.bfloat16),
                    preferred_element_type=jnp.float32) + b.astype(jnp.float32)
        if li != n_enc - 1 and li != n_layers - 1:
            a = jnp.maximum(a, 0.0)
        h = a.astype(jnp.bfloat16)
        if li == n_enc - 1:
            z = h
    return h, z


if __name__ == "__main__":
    # Module-consistent shapes: nsize=64, latent_size=8, deepness=3
    # -> factor = 2, encoder 64->32->16->8, decoder 8->16->32->64.
    # batch=256 -> tb=128, grid=(2,): exercises pipelining + the parallel axis.
    NSIZE, LATENT, DEEPNESS, BATCH = 64, 8, 3, 256

    enc_sizes, dec_sizes = autoencoder_layer_sizes(NSIZE, LATENT, DEEPNESS)

    key = jax.random.PRNGKey(0)
    key, kx = jax.random.split(key)
    x = jax.random.normal(kx, (BATCH, NSIZE), jnp.float32)
    params = init_params(key, enc_sizes, dec_sizes)

    x_rec, z = signal_autoencoder_forward(x, params, enc_sizes, dec_sizes)
    jax.block_until_ready((x_rec, z))

    x_rec_ref, z_ref = reference_forward(x, params, len(enc_sizes), len(dec_sizes))
    assert x_rec.shape == (BATCH, NSIZE) and z.shape == (BATCH, LATENT)
    assert jnp.allclose(x_rec, x_rec_ref.astype(jnp.float32), atol=2e-2, rtol=2e-2)
    assert jnp.allclose(z, z_ref.astype(jnp.float32), atol=2e-2, rtol=2e-2)

    print("KERNEL_OK")
</pallas_src>

<mosaic_0001>
module attributes {stable_mosaic.version = 11 : i64} {
  func.func @_ae_kernel(%arg0: i32, %arg1: memref<128x128xbf16, #tpu.memory_space<vmem>>, %arg2: memref<128x128xbf16, #tpu.memory_space<vmem>>, %arg3: memref<1x128xf32, #tpu.memory_space<vmem>>, %arg4: memref<128x128xbf16, #tpu.memory_space<vmem>>, %arg5: memref<1x128xf32, #tpu.memory_space<vmem>>, %arg6: memref<128x128xbf16, #tpu.memory_space<vmem>>, %arg7: memref<1x128xf32, #tpu.memory_space<vmem>>, %arg8: memref<128x128xbf16, #tpu.memory_space<vmem>>, %arg9: memref<1x128xf32, #tpu.memory_space<vmem>>, %arg10: memref<128x128xbf16, #tpu.memory_space<vmem>>, %arg11: memref<1x128xf32, #tpu.memory_space<vmem>>, %arg12: memref<128x128xbf16, #tpu.memory_space<vmem>>, %arg13: memref<1x128xf32, #tpu.memory_space<vmem>>, %arg14: memref<128x128xbf16, #tpu.memory_space<vmem>>, %arg15: memref<128x8xbf16, #tpu.memory_space<vmem>>) attributes {dimension_semantics = [#tpu.dimension_semantics<parallel>], iteration_bounds = array<i64: 2>, scalar_prefetch = 0 : i64, scratch_operands = 0 : i64, tpu.core_type = #tpu.core_type<tc>, window_params = [{transform_indices = @transform_0, window_bounds = array<i64: 128, 128>}, {pipeline_mode = #tpu.pipeline_mode<synchronous>, transform_indices = @transform_1, window_bounds = array<i64: 128, 128>}, {pipeline_mode = #tpu.pipeline_mode<synchronous>, transform_indices = @transform_2, window_bounds = array<i64: 1, 128>}, {pipeline_mode = #tpu.pipeline_mode<synchronous>, transform_indices = @transform_3, window_bounds = array<i64: 128, 128>}, {pipeline_mode = #tpu.pipeline_mode<synchronous>, transform_indices = @transform_4, window_bounds = array<i64: 1, 128>}, {pipeline_mode = #tpu.pipeline_mode<synchronous>, transform_indices = @transform_5, window_bounds = array<i64: 128, 128>}, {pipeline_mode = #tpu.pipeline_mode<synchronous>, transform_indices = @transform_6, window_bounds = array<i64: 1, 128>}, {pipeline_mode = #tpu.pipeline_mode<synchronous>, transform_indices = @transform_7, window_bounds = array<i64: 128, 128>}, {pipeline_mode = #tpu.pipeline_mode<synchronous>, transform_indices = @transform_8, window_bounds = array<i64: 1, 128>}, {pipeline_mode = #tpu.pipeline_mode<synchronous>, transform_indices = @transform_9, window_bounds = array<i64: 128, 128>}, {pipeline_mode = #tpu.pipeline_mode<synchronous>, transform_indices = @transform_10, window_bounds = array<i64: 1, 128>}, {pipeline_mode = #tpu.pipeline_mode<synchronous>, transform_indices = @transform_11, window_bounds = array<i64: 128, 128>}, {pipeline_mode = #tpu.pipeline_mode<synchronous>, transform_indices = @transform_12, window_bounds = array<i64: 1, 128>}, {transform_indices = @transform_13, window_bounds = array<i64: 128, 128>}, {transform_indices = @transform_14, window_bounds = array<i64: 128, 8>}]} {
    %c0 = arith.constant 0 : index
    %c0_0 = arith.constant 0 : index
    %0 = vector.load %arg1[%c0, %c0_0] : memref<128x128xbf16, #tpu.memory_space<vmem>>, vector<128x128xbf16>
    %c0_1 = arith.constant 0 : index
    %c0_2 = arith.constant 0 : index
    %1 = vector.load %arg2[%c0_1, %c0_2] : memref<128x128xbf16, #tpu.memory_space<vmem>>, vector<128x128xbf16>
    %c0_3 = arith.constant 0 : index
    %c0_4 = arith.constant 0 : index
    %2 = vector.load %arg3[%c0_3, %c0_4] : memref<1x128xf32, #tpu.memory_space<vmem>>, vector<1x128xf32>
    %cst = arith.constant dense<0.000000e+00> : vector<128x128xf32>
    %3 = tpu.matmul %0, %1, %cst {dimension_numbers = #tpu.dot_dimension_numbers<[1], [0], [0], [1], [0, 0, 1, 1], [], []>} : vector<128x128xbf16>, vector<128x128xbf16>, vector<128x128xf32> -> vector<128x128xf32>
    %4 = vector.broadcast %2 : vector<1x128xf32> to vector<128x128xf32>
    %5 = arith.addf %3, %4 : vector<128x128xf32>
    %cst_5 = arith.constant 0.000000e+00 : f32
    %6 = vector.broadcast %cst_5 : f32 to vector<128x128xf32>
    %7 = arith.maximumf %5, %6 : vector<128x128xf32>
    %8 = arith.truncf %7 : vector<128x128xf32> to vector<128x128xbf16>
    %c0_6 = arith.constant 0 : index
    %c0_7 = arith.constant 0 : index
    %9 = vector.load %arg4[%c0_6, %c0_7] : memref<128x128xbf16, #tpu.memory_space<vmem>>, vector<128x128xbf16>
    %c0_8 = arith.constant 0 : index
    %c0_9 = arith.constant 0 : index
    %10 = vector.load %arg5[%c0_8, %c0_9] : memref<1x128xf32, #tpu.memory_space<vmem>>, vector<1x128xf32>
    %cst_10 = arith.constant dense<0.000000e+00> : vector<128x128xf32>
    %11 = tpu.matmul %8, %9, %cst_10 {dimension_numbers = #tpu.dot_dimension_numbers<[1], [0], [0], [1], [0, 0, 1, 1], [], []>} : vector<128x128xbf16>, vector<128x128xbf16>, vector<128x128xf32> -> vector<128x128xf32>
    %12 = vector.broadcast %10 : vector<1x128xf32> to vector<128x128xf32>
    %13 = arith.addf %11, %12 : vector<128x128xf32>
    %cst_11 = arith.constant 0.000000e+00 : f32
    %14 = vector.broadcast %cst_11 : f32 to vector<128x128xf32>
    %15 = arith.maximumf %13, %14 : vector<128x128xf32>
    %16 = arith.truncf %15 : vector<128x128xf32> to vector<128x128xbf16>
    %c0_12 = arith.constant 0 : index
    %c0_13 = arith.constant 0 : index
    %17 = vector.load %arg6[%c0_12, %c0_13] : memref<128x128xbf16, #tpu.memory_space<vmem>>, vector<128x128xbf16>
    %c0_14 = arith.constant 0 : index
    %c0_15 = arith.constant 0 : index
    %18 = vector.load %arg7[%c0_14, %c0_15] : memref<1x128xf32, #tpu.memory_space<vmem>>, vector<1x128xf32>
    %cst_16 = arith.constant dense<0.000000e+00> : vector<128x128xf32>
    %19 = tpu.matmul %16, %17, %cst_16 {dimension_numbers = #tpu.dot_dimension_numbers<[1], [0], [0], [1], [0, 0, 1, 1], [], []>} : vector<128x128xbf16>, vector<128x128xbf16>, vector<128x128xf32> -> vector<128x128xf32>
    %20 = vector.broadcast %18 : vector<1x128xf32> to vector<128x128xf32>
    %21 = arith.addf %19, %20 : vector<128x128xf32>
    %22 = arith.truncf %21 : vector<128x128xf32> to vector<128x128xbf16>
    %23 = vector.extract_strided_slice %22 {offsets = [0, 0], sizes = [128, 8], strides = [1, 1]} : vector<128x128xbf16> to vector<128x8xbf16>
    %c0_17 = arith.constant 0 : index
    %c0_18 = arith.constant 0 : index
    %24 = vector.load %arg15[%c0_17, %c0_18] : memref<128x8xbf16, #tpu.memory_space<vmem>>, vector<128x8xbf16>
    tpu.vector_store %arg15[%c0_17, %c0_18], %23 {strides = array<i32>} : memref<128x8xbf16, #tpu.memory_space<vmem>>, vector<128x8xbf16>,
    %c0_19 = arith.constant 0 : index
    %c0_20 = arith.constant 0 : index
    %25 = vector.load %arg8[%c0_19, %c0_20] : memref<128x128xbf16, #tpu.memory_space<vmem>>, vector<128x128xbf16>
    %c0_21 = arith.constant 0 : index
    %c0_22 = arith.constant 0 : index
    %26 = vector.load %arg9[%c0_21, %c0_22] : memref<1x128xf32, #tpu.memory_space<vmem>>, vector<1x128xf32>
    %cst_23 = arith.constant dense<0.000000e+00> : vector<128x128xf32>
    %27 = tpu.matmul %22, %25, %cst_23 {dimension_numbers = #tpu.dot_dimension_numbers<[1], [0], [0], [1], [0, 0, 1, 1], [], []>} : vector<128x128xbf16>, vector<128x128xbf16>, vector<128x128xf32> -> vector<128x128xf32>
    %28 = vector.broadcast %26 : vector<1x128xf32> to vector<128x128xf32>
    %29 = arith.addf %27, %28 : vector<128x128xf32>
    %cst_24 = arith.constant 0.000000e+00 : f32
    %30 = vector.broadcast %cst_24 : f32 to vector<128x128xf32>
    %31 = arith.maximumf %29, %30 : vector<128x128xf32>
    %32 = arith.truncf %31 : vector<128x128xf32> to vector<128x128xbf16>
    %c0_25 = arith.constant 0 : index
    %c0_26 = arith.constant 0 : index
    %33 = vector.load %arg10[%c0_25, %c0_26] : memref<128x128xbf16, #tpu.memory_space<vmem>>, vector<128x128xbf16>
    %c0_27 = arith.constant 0 : index
    %c0_28 = arith.constant 0 : index
    %34 = vector.load %arg11[%c0_27, %c0_28] : memref<1x128xf32, #tpu.memory_space<vmem>>, vector<1x128xf32>
    %cst_29 = arith.constant dense<0.000000e+00> : vector<128x128xf32>
    %35 = tpu.matmul %32, %33, %cst_29 {dimension_numbers = #tpu.dot_dimension_numbers<[1], [0], [0], [1], [0, 0, 1, 1], [], []>} : vector<128x128xbf16>, vector<128x128xbf16>, vector<128x128xf32> -> vector<128x128xf32>
    %36 = vector.broadcast %34 : vector<1x128xf32> to vector<128x128xf32>
    %37 = arith.addf %35, %36 : vector<128x128xf32>
    %cst_30 = arith.constant 0.000000e+00 : f32
    %38 = vector.broadcast %cst_30 : f32 to vector<128x128xf32>
    %39 = arith.maximumf %37, %38 : vector<128x128xf32>
    %40 = arith.truncf %39 : vector<128x128xf32> to vector<128x128xbf16>
    %c0_31 = arith.constant 0 : index
    %c0_32 = arith.constant 0 : index
    %41 = vector.load %arg12[%c0_31, %c0_32] : memref<128x128xbf16, #tpu.memory_space<vmem>>, vector<128x128xbf16>
    %c0_33 = arith.constant 0 : index
    %c0_34 = arith.constant 0 : index
    %42 = vector.load %arg13[%c0_33, %c0_34] : memref<1x128xf32, #tpu.memory_space<vmem>>, vector<1x128xf32>
    %cst_35 = arith.constant dense<0.000000e+00> : vector<128x128xf32>
    %43 = tpu.matmul %40, %41, %cst_35 {dimension_numbers = #tpu.dot_dimension_numbers<[1], [0], [0], [1], [0, 0, 1, 1], [], []>} : vector<128x128xbf16>, vector<128x128xbf16>, vector<128x128xf32> -> vector<128x128xf32>
    %44 = vector.broadcast %42 : vector<1x128xf32> to vector<128x128xf32>
    %45 = arith.addf %43, %44 : vector<128x128xf32>
    %46 = arith.truncf %45 : vector<128x128xf32> to vector<128x128xbf16>
    %c0_36 = arith.constant 0 : index
    %c0_37 = arith.constant 0 : index
    %47 = vector.load %arg14[%c0_36, %c0_37] : memref<128x128xbf16, #tpu.memory_space<vmem>>, vector<128x128xbf16>
    tpu.vector_store %arg14[%c0_36, %c0_37], %46 {strides = array<i32>} : memref<128x128xbf16, #tpu.memory_space<vmem>>, vector<128x128xbf16>,
    return
  }
  func.func @transform_0(%arg0: i32) -> (i32, i32) {
    %c0_i32 = arith.constant 0 : i32
    %c0_i32_0 = arith.constant 0 : i32
    return %arg0, %c0_i32 : i32, i32
  }
  func.func @transform_1(%arg0: i32) -> (i32, i32) {
    %c0_i32 = arith.constant 0 : i32
    %c0_i32_0 = arith.constant 0 : i32
    %c0_i32_1 = arith.constant 0 : i32
    return %c0_i32, %c0_i32_0 : i32, i32
  }
  func.func @transform_2(%arg0: i32) -> (i32, i32) {
    %c0_i32 = arith.constant 0 : i32
    %c0_i32_0 = arith.constant 0 : i32
    %c0_i32_1 = arith.constant 0 : i32
    return %c0_i32, %c0_i32_0 : i32, i32
  }
  func.func @transform_3(%arg0: i32) -> (i32, i32) {
    %c0_i32 = arith.constant 0 : i32
    %c0_i32_0 = arith.constant 0 : i32
    %c0_i32_1 = arith.constant 0 : i32
    return %c0_i32, %c0_i32_0 : i32, i32
  }
  func.func @transform_4(%arg0: i32) -> (i32, i32) {
    %c0_i32 = arith.constant 0 : i32
    %c0_i32_0 = arith.constant 0 : i32
    %c0_i32_1 = arith.constant 0 : i32
    return %c0_i32, %c0_i32_0 : i32, i32
  }
  func.func @transform_5(%arg0: i32) -> (i32, i32) {
    %c0_i32 = arith.constant 0 : i32
    %c0_i32_0 = arith.constant 0 : i32
    %c0_i32_1 = arith.constant 0 : i32
    return %c0_i32, %c0_i32_0 : i32, i32
  }
  func.func @transform_6(%arg0: i32) -> (i32, i32) {
    %c0_i32 = arith.constant 0 : i32
    %c0_i32_0 = arith.constant 0 : i32
    %c0_i32_1 = arith.constant 0 : i32
    return %c0_i32, %c0_i32_0 : i32, i32
  }
  func.func @transform_7(%arg0: i32) -> (i32, i32) {
    %c0_i32 = arith.constant 0 : i32
    %c0_i32_0 = arith.constant 0 : i32
    %c0_i32_1 = arith.constant 0 : i32
    return %c0_i32, %c0_i32_0 : i32, i32
  }
  func.func @transform_8(%arg0: i32) -> (i32, i32) {
    %c0_i32 = arith.constant 0 : i32
    %c0_i32_0 = arith.constant 0 : i32
    %c0_i32_1 = arith.constant 0 : i32
    return %c0_i32, %c0_i32_0 : i32, i32
  }
  func.func @transform_9(%arg0: i32) -> (i32, i32) {
    %c0_i32 = arith.constant 0 : i32
    %c0_i32_0 = arith.constant 0 : i32
    %c0_i32_1 = arith.constant 0 : i32
    return %c0_i32, %c0_i32_0 : i32, i32
  }
  func.func @transform_10(%arg0: i32) -> (i32, i32) {
    %c0_i32 = arith.constant 0 : i32
    %c0_i32_0 = arith.constant 0 : i32
    %c0_i32_1 = arith.constant 0 : i32
    return %c0_i32, %c0_i32_0 : i32, i32
  }
  func.func @transform_11(%arg0: i32) -> (i32, i32) {
    %c0_i32 = arith.constant 0 : i32
    %c0_i32_0 = arith.constant 0 : i32
    %c0_i32_1 = arith.constant 0 : i32
    return %c0_i32, %c0_i32_0 : i32, i32
  }
  func.func @transform_12(%arg0: i32) -> (i32, i32) {
    %c0_i32 = arith.constant 0 : i32
    %c0_i32_0 = arith.constant 0 : i32
    %c0_i32_1 = arith.constant 0 : i32
    return %c0_i32, %c0_i32_0 : i32, i32
  }
  func.func @transform_13(%arg0: i32) -> (i32, i32) {
    %c0_i32 = arith.constant 0 : i32
    %c0_i32_0 = arith.constant 0 : i32
    return %arg0, %c0_i32 : i32, i32
  }
  func.func @transform_14(%arg0: i32) -> (i32, i32) {
    %c0_i32 = arith.constant 0 : i32
    %c0_i32_0 = arith.constant 0 : i32
    return %arg0, %c0_i32 : i32, i32
  }
}

</mosaic_0001>

<bundles_post_ra>
// kernel: tpu_custom_call.1
= control target key start
LH: loop header
LB: loop body
LE: loop exit
PB: predicated region body
PF: predicated region fallthrough
CT: control target
= control target key end

     0   :  { %s3565_s0 = inlined_call_operand.hbm [shape: bf16[256,128], index: 0, kind: input, shape index: {}]   ;;  %s3566_s1 = inlined_call_operand.hbm [shape: bf16[128,128], index: 1, kind: input, shape index: {}]   ;;  %s3567_s2 = inlined_call_operand.vmem [shape: f32[1,128], index: 2, kind: input, shape index: {}]   ;;  %s3568_s3 = inlined_call_operand.hbm [shape: bf16[128,128], index: 3, kind: input, shape index: {}]   ;;  %s3569_s4 = inlined_call_operand.vmem [shape: f32[1,128], index: 4, kind: input, shape index: {}]   ;;  %s3570_s5 = inlined_call_operand.hbm [shape: bf16[128,128], index: 5, kind: input, shape index: {}]   ;;  %s3571_s6 = inlined_call_operand.vmem [shape: f32[1,128], index: 6, kind: input, shape index: {}]   ;;  %s3572_s7 = inlined_call_operand.hbm [shape: bf16[128,128], index: 7, kind: input, shape index: {}]   ;;  %s3573_s8 = inlined_call_operand.vmem [shape: f32[1,128], index: 8, kind: input, shape index: {}]   ;;  %s3574_s9 = inlined_call_operand.hbm [shape: bf16[128,128], index: 9, kind: input, shape index: {}]   ;;  %s3575_s10 = inlined_call_operand.vmem [shape: f32[1,128], index: 10, kind: input, shape index: {}]   ;;  %s3576_s11 = inlined_call_operand.hbm [shape: bf16[128,128], index: 11, kind: input, shape index: {}]   ;;  %s3577_s12 = inlined_call_operand.vmem [shape: f32[1,128], index: 12, kind: input, shape index: {}]   ;;  %s3578_s13 = inlined_call_operand.hbm [shape: bf16[256,128], index: 13, kind: output, shape index: {0}]   ;;  %s3579_s14 = inlined_call_operand.vmem [shape: bf16[256,8], index: 14, kind: output, shape index: {1}]  }
   0x1   :  { %3585 = sst [smem:[#allocation20_spill]] %s3566_s1 }
   0x2   :  { %3586 = sst [smem:[#allocation21_spill]] %s3571_s6 }
   0x3   :  { %3587 = sst [smem:[#allocation22_spill]] %s3573_s8 }
   0x4   :  { %3588 = sst [smem:[#allocation23_spill]] %s3575_s10 }
   0x5   :  { %3589 = sst [smem:[#allocation24_spill]] %s3577_s12 }
   0x6   :  { %3590 = sst [smem:[#allocation25_spill]] %s3578_s13 }
   0x7   :  { %3591 = sst [smem:[#allocation26_spill]] %s3579_s14 }
   0x8   :  { %20 = vsyncpa [#allocation3], 0 }
   0x9   :  { %22 = vsyncpa [#allocation3 + $0x1], 0 }
   0xa   :  { %23 = vsyncpa [#allocation6], 0 }
   0xb   :  { %24 = vsyncpa [#allocation9], 0 }
   0xc   :  { %25 = vsyncpa [#allocation12], 0 }
   0xd   :  { %26 = vsyncpa [#allocation4], 0 }
   0xe   :  { %28 = vsyncpa [#allocation4 + $0x1], 0  ;;  %s3120_s29 = smov 0   ;;  %s3122_s30 = smov 0  }
   0xf   :  { %s3124_s15 = smov 0   ;;  %s3126_s16 = smov 0  }
  0x10 LB: > { %s3033_s17 = smov [#allocation5]   ;;  %s3141_s19 = sadd.s32 4294967295, %s3031_s16   ;;  %s3031_s16 = sphi %s3126_s16, %s3622_s16   ;;  %s3027_s15 = sphi %s3124_s15, %s3621_s15   ;;  %s3023_s30 = sphi %s3122_s30, %s3620_s30   ;;  %s3019_s29 = sphi %s3120_s29, %s3619_s29  }
  0x11   : > { %s381_s18 = sshll.u32 %s3033_s17, 4  ;;  %p2098_p0 = scmp.ge.s32.totalorder %s3031_s16, 1  ;;  %s3146_s18 = int_to_ptr.vmem [resolvable:$true] %s381_s18 }
  0x12   : > { %p3581_p1 = scmp.eq.s32.totalorder %s3141_s19, 0  ;;  %p369_p2 = scmp.lt.s32.totalorder %s3031_s16, 3 }
  0x13   : > { %s3034_s21 = smov [#allocation8]   ;;  %s3035_s24 = smov [#allocation11]  }
  0x14   : > { %p3148_p3 = pnand %p2098_p0, %p369_p2  ;;  %s413_s22 = sshll.u32 %s3034_s21, 4  ;;  %s3161_s22 = int_to_ptr.vmem [resolvable:$true] %s413_s22 }
  0x15   : > { %s445_s25 = sshll.u32 %s3035_s24, 4  ;;  %s3594_s1 = sld [smem:[#allocation20_spill]]  ;;  %s3163_s25 = int_to_ptr.vmem [resolvable:$true] %s445_s25 }
  0x16   : > { %s3592_s20 = scalar_select %p3148_p3, 1, 0 }
  0x17   : > { %p2616_p5 = pneg %p3148_p3 }
  0x19   : > { %p3157_p6 = pnand %p2616_p5, %p3581_p1 }
  0x1b   : > { %s2755_s28 = scalar_lea.hbm %s3594_s1, 1024  ;;  %p3173_p8 = pneg %p3157_p6 }
  0x1c   : > { %p2756_p7 = scmp.ne.s32.totalorder %s3594_s1, %s2755_s28  ;;  %p2762_p11 = scmp.lt.u32.totalorder %s2755_s28, %s3594_s1 }
  0x1e   : > { %p2758_p9 = pnand %p3173_p8, %p2756_p7 }
  0x20   : > { %p2759_p10 = pneg %p2758_p9 }
  0x22   : > { %p2764_p12 = pnand %p2762_p11, %p2759_p10 }
  0x24   : > { %2767 = shalt.err (!%p2764_p12)
}
  0x25   : > { %s2768_s13 = scalar_lea.vmem %s3146_s18, 1024  ;;  %p2776_p5 = scmp.lt.s32.totalorder %s3146_s18, %s3146_s18 }
  0x26   : > { %p2769_p13 = scmp.ne.s32.totalorder %s3146_s18, %s2768_s13  ;;  %p2777_p4 = scmp.lt.s32.totalorder %s2768_s13, %s2768_s13 }
  0x28   : > { %p2771_p0 = pnand %p2769_p13, %p3173_p8  ;;  %p2778_p7 = por %p2777_p4, %p2776_p5 }
  0x2a   : > { %p2772_p2 = pneg %p2771_p0 }
  0x2c   : > { %p2779_p9 = pnand %p2778_p7, %p2772_p2 }
  0x2e   : > { %2782 = shalt.err (!%p2779_p9)
}
  0x2f   : > { %s3583_s26 = smov 64   ;;  %s3037_s12 = smov 4  }
  0x30   : > { %2619 = dma.hbm_to_vmem [thread:$0]  (!%p3157_p6), %s3594_s1, 1024, %s3146_s18, [#allocation6], %s3583_s26, %s3583_s26, %s3037_s12  }
  0x31   : > { %s2783_s13 = scalar_lea.hbm %s3570_s5, 1024 }
  0x32   : > { %p2784_p4 = scmp.ne.s32.totalorder %s3570_s5, %s2783_s13  ;;  %p2790_p12 = scmp.lt.u32.totalorder %s2783_s13, %s3570_s5 }
  0x34   : > { %p2786_p10 = pnand %p2784_p4, %p3173_p8 }
  0x36   : > { %p2787_p11 = pneg %p2786_p10 }
  0x38   : > { %p2792_p13 = pnand %p2790_p12, %p2787_p11 }
  0x3a   : > { %2795 = shalt.err (!%p2792_p13)
}
  0x3b   : > { %s2796_s18 = scalar_lea.vmem %s3161_s22, 1024  ;;  %p2804_p7 = scmp.lt.s32.totalorder %s3161_s22, %s3161_s22 }
  0x3c   : > { %p2797_p0 = scmp.ne.s32.totalorder %s3161_s22, %s2796_s18  ;;  %p2805_p9 = scmp.lt.s32.totalorder %s2796_s18, %s2796_s18 }
  0x3e   : > { %p2799_p2 = pnand %p2797_p0, %p3173_p8  ;;  %p2806_p4 = por %p2805_p9, %p2804_p7 }
  0x40   : > { %p2800_p5 = pneg %p2799_p2 }
  0x42   : > { %p2807_p10 = pnand %p2806_p4, %p2800_p5 }
  0x44   : > { %2810 = shalt.err (!%p2807_p10)
}
  0x45   : > { %2625 = dma.hbm_to_vmem [thread:$0]  (!%p3157_p6), %s3570_s5, 1024, %s3161_s22, [#allocation9], %s3583_s26, %s3583_s26, %s3037_s12  }
  0x46   : > { %s2811_s27 = scalar_lea.hbm %s3574_s9, 1024 }
  0x47   : > { %p2812_p11 = scmp.ne.s32.totalorder %s3574_s9, %s2811_s27  ;;  %p2818_p0 = scmp.lt.u32.totalorder %s2811_s27, %s3574_s9 }
  0x49   : > { %p2814_p12 = pnand %p2812_p11, %p3173_p8 }
  0x4b   : > { %p2815_p13 = pneg %p2814_p12 }
  0x4d   : > { %p2820_p2 = pnand %p2818_p0, %p2815_p13 }
  0x4f   : > { %2823 = shalt.err (!%p2820_p2)
}
  0x50   : > { %s2824_s22 = scalar_lea.vmem %s3163_s25, 1024  ;;  %p2832_p4 = scmp.lt.s32.totalorder %s3163_s25, %s3163_s25 }
  0x51   : > { %p2825_p5 = scmp.ne.s32.totalorder %s3163_s25, %s2824_s22  ;;  %p2833_p10 = scmp.lt.s32.totalorder %s2824_s22, %s2824_s22 }
  0x53   : > { %p2827_p7 = pnand %p2825_p5, %p3173_p8  ;;  %p2834_p11 = por %p2833_p10, %p2832_p4 }
  0x55   : > { %p2828_p9 = pneg %p2827_p7 }
  0x57   : > { %p2835_p12 = pnand %p2834_p11, %p2828_p9 }
  0x59   : > { %2838 = shalt.err (!%p2835_p12)
}
  0x5a   : > { %2631 = dma.hbm_to_vmem [thread:$0]  (!%p3157_p6), %s3574_s9, 1024, %s3163_s25, [#allocation12], %s3583_s26, %s3583_s26, %s3037_s12  }
  0x5b   : > { %s3038_s8 = smov [#allocation7]   ;;  %s3039_s14 = smov [#allocation10]  }
  0x5c   : > { %s397_s10 = sshll.u32 %s3038_s8, 4  ;;  %s429_s27 = sshll.u32 %s3039_s14, 4  ;;  %s398_s10 = int_to_ptr.vmem [resolvable:$true] %s397_s10  ;;  %s430_s27 = int_to_ptr.vmem [resolvable:$true] %s429_s27 }
  0x5d   : > { %s2839_s24 = scalar_lea.hbm %s3568_s3, 1024 }
  0x5e   : > { %p2840_p13 = scmp.ne.s32.totalorder %s3568_s3, %s2839_s24  ;;  %p2846_p5 = scmp.lt.u32.totalorder %s2839_s24, %s3568_s3 }
  0x60   : > { %p2842_p0 = pnand %p2840_p13, %p3173_p8 }
  0x62   : > { %p2843_p2 = pneg %p2842_p0 }
  0x64   : > { %p2848_p7 = pnand %p2846_p5, %p2843_p2 }
  0x66   : > { %2851 = shalt.err (!%p2848_p7)
}
  0x67   : > { %s2852_s25 = scalar_lea.vmem %s398_s10, 1024  ;;  %p2860_p11 = scmp.lt.s32.totalorder %s398_s10, %s398_s10 }
  0x68   : > { %p2853_p9 = scmp.ne.s32.totalorder %s398_s10, %s2852_s25  ;;  %p2861_p12 = scmp.lt.s32.totalorder %s2852_s25, %s2852_s25 }
  0x6a   : > { %p2855_p4 = pnand %p2853_p9, %p3173_p8  ;;  %p2862_p1 = por %p2861_p12, %p2860_p11 }
  0x6c   : > { %p2856_p10 = pneg %p2855_p4 }
  0x6e   : > { %p2863_p3 = pnand %p2862_p1, %p2856_p10 }
  0x70   : > { %2866 = shalt.err (!%p2863_p3)
}
  0x71   : > { %2622 = dma.hbm_to_vmem [thread:$0]  (!%p3157_p6), %s3568_s3, 1024, %s398_s10, [#allocation6], %s3583_s26, %s3583_s26, %s3037_s12  }
  0x72   : > { %s2867_s28 = scalar_lea.hbm %s3572_s7, 1024 }
  0x73   : > { %p2868_p1 = scmp.ne.s32.totalorder %s3572_s7, %s2867_s28  ;;  %p2874_p0 = scmp.lt.u32.totalorder %s2867_s28, %s3572_s7 }
  0x75   : > { %p2870_p3 = pnand %p2868_p1, %p3173_p8 }
  0x77   : > { %p2871_p13 = pneg %p2870_p3 }
  0x79   : > { %p2876_p2 = pnand %p2874_p0, %p2871_p13 }
  0x7b   : > { %2879 = shalt.err (!%p2876_p2)
}
  0x7c   : > { %s2880_s18 = scalar_lea.vmem %s430_s27, 1024  ;;  %p2888_p4 = scmp.lt.s32.totalorder %s430_s27, %s430_s27 }
  0x7d   : > { %p2881_p5 = scmp.ne.s32.totalorder %s430_s27, %s2880_s18  ;;  %p2889_p10 = scmp.lt.s32.totalorder %s2880_s18, %s2880_s18 }
  0x7f   : > { %p2883_p7 = pnand %p2881_p5, %p3173_p8  ;;  %p2890_p11 = por %p2889_p10, %p2888_p4 }
  0x81   : > { %p2884_p9 = pneg %p2883_p7 }
  0x83   : > { %p2891_p12 = pnand %p2890_p11, %p2884_p9 }
  0x85   : > { %2894 = shalt.err (!%p2891_p12)
}
  0x86   : > { %2628 = dma.hbm_to_vmem [thread:$0]  (!%p3157_p6), %s3572_s7, 1024, %s430_s27, [#allocation9], %s3583_s26, %s3583_s26, %s3037_s12  }
  0x87   : > { %s3040_s1 = smov [#allocation13]   ;;  %s2895_s28 = scalar_lea.hbm %s3576_s11, 1024 }
  0x88   : > { %s461_s6 = sshll.u32 %s3040_s1, 4  ;;  %p2896_p1 = scmp.ne.s32.totalorder %s3576_s11, %s2895_s28  ;;  %s462_s6 = int_to_ptr.vmem [resolvable:$true] %s461_s6 }
  0x89   : > { %p2902_p0 = scmp.lt.u32.totalorder %s2895_s28, %s3576_s11 }
  0x8a   : > { %p2898_p3 = pnand %p2896_p1, %p3173_p8 }
  0x8c   : > { %p2899_p13 = pneg %p2898_p3 }
  0x8e   : > { %p2904_p2 = pnand %p2902_p0, %p2899_p13 }
  0x90   : > { %2907 = shalt.err (!%p2904_p2)
}
  0x91   : > { %s2908_s27 = scalar_lea.vmem %s462_s6, 1024  ;;  %p2916_p4 = scmp.lt.s32.totalorder %s462_s6, %s462_s6 }
  0x92   : > { %p2909_p5 = scmp.ne.s32.totalorder %s462_s6, %s2908_s27  ;;  %p2917_p10 = scmp.lt.s32.totalorder %s2908_s27, %s2908_s27 }
  0x94   : > { %p2911_p7 = pnand %p2909_p5, %p3173_p8  ;;  %p2918_p11 = por %p2917_p10, %p2916_p4 }
  0x96   : > { %p2912_p9 = pneg %p2911_p7 }
  0x98   : > { %p2919_p12 = pnand %p2918_p11, %p2912_p9 }
  0x9a   : > { %2922 = shalt.err (!%p2919_p12)
}
  0x9b   : > { %2634 = dma.hbm_to_vmem [thread:$0]  (!%p3157_p6), %s3576_s11, 1024, %s462_s6, [#allocation12], %s3583_s26, %s3583_s26, %s3037_s12  }
  0x9c   : > { %s2097_s23 = sadd.s32 4294967294, %s3031_s16   ;;  %s3314_s21 = sadd.s32 1, %s3031_s16  }
  0x9d   : > { %s38_s25 = ssub.s32 %s3031_s16, %s3314_s21  ;;  %s41_s1 = sadd.s32 1, %s3027_s15 }
  0x9e   : > { %p39_p8 = scmp.eq.s32.totalorder %s38_s25, 0  ;;  %p48_p1 = scmp.ne.s32.totalorder %s3027_s15, %s3023_s30 }
  0x9f   : > { %p49_p3 = scmp.eq.s32.totalorder %s3031_s16, 0  ;;  %p54_p13 = scmp.ne.s32.totalorder %s3023_s30, %s3019_s29 }
  0xa0   : > { %s3325_s8 = scalar_select %p39_p8, %s3027_s15, %s41_s1  }
  0xa1   : > { %p3327_p0 = por %p49_p3, %p48_p1  ;;  %p3597_p2 = scmp.eq.s32.totalorder %s3141_s19, 0 }
  0xa2   : > { %p330_p5 = scmp.eq.s32.totalorder %s3141_s19, 1  ;;  %p336_p7 = scmp.eq.s32.totalorder %s2097_s23, 1 }
  0xa3   : > { %p3333_p6 = por %p3597_p2, %p54_p13  ;;  %p2649_p9 = scmp.lt.s32.totalorder %s3031_s16, 2 }
  0xa4   : > { %s478_s28 = sand.u32 1, %s3027_s15   ;;  %p3340_p4 = por %p330_p5, %p48_p1 }
  0xa5   : > { %p3344_p10 = por %p336_p7, %p54_p13  ;;  %s2106_s13 = sshll.u32 %s478_s28, 6 }
  0xa6   : > { %s3599_s17 = scalar_select %p3340_p4, 1, 0 }
  0xa7   : > { %s3600_s24 = scalar_select %p3344_p10, 1, 0 }
  0xa8   : > { %s2219_s22 = sshll.u32 %s3031_s16, 10  ;;  %s482_s23 = scalar_lea.vmem [#allocation2], %s2106_s13 }
  0xa9   : > { %s3352_s10 = scalar_lea.hbm %s3565_s0, %s2219_s22  ;;  %s489_s25 = sshll.u32 %s482_s23, 4  ;;  %s3354_s25 = int_to_ptr.vmem [resolvable:$true] %s489_s25 }
  0xaa   : > { %p3358_p11 = pnand %p2649_p9, %p3327_p0  ;;  %s3362_s26 = scalar_lea.sflag [#allocation3], %s478_s28 }
  0xab   : > { %s2923_s27 = scalar_lea.hbm %s3352_s10, 1024  ;;  %s2928_s14 = scalar_lea.hbm %s3565_s0, 2048 }
  0xac   : > { %p2924_p12 = scmp.ne.s32.totalorder %s3352_s10, %s2923_s27  ;;  %p2925_p8 = pneg %p3358_p11 }
  0xad   : > { %p2929_p13 = scmp.lt.u32.totalorder %s3352_s10, %s3565_s0  ;;  %p2930_p0 = scmp.lt.u32.totalorder %s2928_s14, %s2923_s27 }
  0xae   : > { %p2926_p1 = pnand %p2925_p8, %p2924_p12  ;;  %p2932_p5 = scmp.lt.u32.totalorder %s2923_s27, %s3352_s10 }
  0xaf   : > { %p2931_p2 = por %p2930_p0, %p2929_p13 }
  0xb0   : > { %p2927_p3 = pneg %p2926_p1 }
  0xb1   : > { %p2933_p7 = por %p2932_p5, %p2931_p2 }
  0xb3   : > { %p2934_p9 = pnand %p2933_p7, %p2927_p3 }
  0xb5   : > { %2937 = shalt.err (!%p2934_p9)
}
  0xb6   : > { %s2938_s28 = scalar_lea.vmem %s3354_s25, 1024  ;;  %s3041_s13 = smov [#allocation2]  }
  0xb7   : > { %p2939_p12 = scmp.ne.s32.totalorder %s3354_s25, %s2938_s28  ;;  %s2943_s22 = sshll.u32 %s3041_s13, 4  ;;  %s2944_s22 = int_to_ptr.vmem [resolvable:$false] %s2943_s22 }
  0xb8   : > { %s2945_s18 = scalar_lea.vmem %s2944_s22, 2048  ;;  %p2946_p4 = scmp.lt.s32.totalorder %s3354_s25, %s2944_s22 }
  0xb9   : > { %p2941_p1 = pnand %p2939_p12, %p2925_p8  ;;  %p2947_p13 = scmp.lt.s32.totalorder %s2945_s18, %s2938_s28 }
  0xbb   : > { %p2942_p10 = pneg %p2941_p1  ;;  %p2948_p0 = por %p2947_p13, %p2946_p4 }
  0xbd   : > { %p2949_p2 = pnand %p2948_p0, %p2942_p10 }
  0xbf   : > { %2952 = shalt.err (!%p2949_p2)
}
  0xc0   : > { %s3602_s27 = smov 64   ;;  %p3603_p8 = scmp.ne.s32.totalorder %s3592_s20, 0 }
  0xc1   : > { %2638 = dma.hbm_to_vmem [thread:$0]  (!%p3358_p11), %s3352_s10, 1024, %s3354_s25, %s3362_s26, %s3602_s27, %s3602_s27, %s3037_s12  }
  0xc2   : > { %501 = sbr.rel (%p3603_p8) target bundleno = 1611 (0x64b), region = 72  ;;  %s3396_s14 = sand.u32 (!%p3603_p8), 1, %s3023_s30  }
  0xc3   : > { %s2110_s23 = sshll.u32 (!%p3603_p8), %s3396_s14, 6  ;;  %s504_s28 = scalar_lea.sflag (!%p3603_p8), [#allocation3], %s3396_s14 }
  0xc4   : > { %s3402_s1 = scalar_lea.vmem (!%p3603_p8), [#allocation2], %s2110_s23 }
  0xc9   : > { %2998 = dma.done.wait (%p3333_p6), %s504_s28, 1024  }
  0xca   : > { %3000 = vsyncadd (%p3333_p6), %s504_s28, 4294966272  ;;  %p3604_p4 = scmp.eq.s32.totalorder %s3141_s19, 0 }
  0xcc   : > { %3002 = dma.done.wait (%p3604_p4), [#allocation6], 2048   ;;  %p3605_p10 = pmov %p3604_p4 }
  0xcd   : > { %p3606_p11 = pmov %p3604_p4 }
  0xce   : > { %3004 = vsyncadd (%p3605_p10), [#allocation6], 4294965248 }
  0xcf   : > { %3006 = dma.done.wait (%p3606_p11), [#allocation9], 2048   ;;  %p3607_p3 = pmov %p3604_p4 }
  0xd1   : > { %3008 = vsyncadd (%p3607_p3), [#allocation9], 4294965248  ;;  %p3608_p5 = pmov %p3607_p3 }
  0xd2   : > { %p3609_p7 = pmov %p3607_p3 }
  0xd3   : > { %3010 = dma.done.wait (%p3608_p5), [#allocation12], 2048  }
  0xd4   : > { %3012 = vsyncadd (%p3609_p7), [#allocation12], 4294965248  ;;  %v2699_v0 = vld [vmem:[#allocation5] sm:$0xff]   ;;  %v2700_v1 = vld [vmem:[#allocation5 + $0x8] sm:$0xff]   ;;  %s2118_s10 = sshll.u32 %s3141_s19, 4  ;;  %s3610_s22 = sld [smem:[#allocation21_spill]] }
  0xd5   : > { %2396 = vmatprep.subr.bf16.mxu0 %v2699_v0  ;;  %v2701_v2 = vld [vmem:[#allocation5 + $0x10] sm:$0xff]   ;;  %v2702_v3 = vld [vmem:[#allocation5 + $0x18] sm:$0xff]   ;;  %v2707_v4 = vld [vmem:[%s3402_s1] sm:$0xff]   ;;  %p584_p6 = scmp.lt.s32.totalorder %s2118_s10, 31  ;;  %vm1270_vm0 = vcmask 60416   ;;  %s3612_s6 = sld [smem:[#allocation22_spill]] }
  0xd6   : > { %2397 = vmatpush3.bf16.msra.mxu0 %v2699_v0  ;;  %2412 = vmatprep.mubr.bf16.mxu0 %v2707_v4  ;;  %v2703_v5 = vld [vmem:[#allocation5 + $0x20] sm:$0xff]   ;;  %v2704_v6 = vld [vmem:[#allocation5 + $0x28] sm:$0xff]   ;;  %v2705_v9 = vld [vmem:[#allocation5 + $0x30] sm:$0xff]   ;;  %s3613_s13 = sld [smem:[#allocation23_spill]]  ;;  %s3614_s27 = sld [smem:[#allocation24_spill]] }
  0xd7   : > { %2398 = vmatprep.subr.bf16.mxu0 %v2700_v1  ;;  %v2715_v7 = vld [vmem:[#allocation7] sm:$0xff]   ;;  %v2716_v8 = vld [vmem:[#allocation7 + $0x8] sm:$0xff]   ;;  %v2717_v10 = vld [vmem:[#allocation7 + $0x10] sm:$0xff]   ;;  %s3624_s10 = smov (!%p584_p6, %s2118_s10), 31  ;;  %s3504_s28 = scalar_lea.vmem [#allocation14], %s2110_s23 }
  0xd8   : > { %2428 = vmatprep.subr.bf16.mxu1 %v2715_v7  ;;  %v2706_v11 = vld [vmem:[#allocation5 + $0x38] sm:$0xff]   ;;  %v2719_v13 = vld [vmem:[#allocation7 + $0x20] sm:$0xff]   ;;  %v2708_v14 = vld [vmem:[%s3402_s1 + $0x8] sm:$0xff]   ;;  %s2119_s18 = sshll.u32 %s3624_s10, 2  ;;  %s1938_s23 = sshll.u32 %s3504_s28, 4  ;;  %s3514_s23 = int_to_ptr.vmem [resolvable:$true] %s1938_s23 }
  0xd9   : > { %2429 = vmatpush3.bf16.msra.mxu1 %v2715_v7  ;;  %v2718_v12 = vld [vmem:[#allocation7 + $0x18] sm:$0xff]   ;;  %v2709_v15 = vld [vmem:[%s3402_s1 + $0x10] sm:$0xff]   ;;  %v2720_v16 = vld [vmem:[#allocation7 + $0x28] sm:$0xff]   ;;  %s3615_s12 = sld [smem:[#allocation25_spill]]  ;;  %s2953_s10 = scalar_lea.vmem %s3514_s23, 1024 }
  0xda   : > { %2399 = vmatpush3.bf16.msra.mxu0 %v2700_v1  ;;  %2430 = vmatprep.subr.bf16.mxu1 %v2716_v8  ;;  %v2710_v17 = vld [vmem:[%s3402_s1 + $0x18] sm:$0xff]   ;;  %v2711_v18 = vld [vmem:[%s3402_s1 + $0x20] sm:$0xff]   ;;  %v2712_v19 = vld [vmem:[%s3402_s1 + $0x28] sm:$0xff]   ;;  %p2954_p9 = scmp.ne.s32.totalorder %s3514_s23, %s2953_s10  ;;  %p3616_p12 = scmp.ne.s32.totalorder %s3599_s17, 0 }
  0xdb   : > { %2400 = vmatprep.subr.bf16.mxu0 %v2701_v2  ;;  %v2713_v20 = vld [vmem:[%s3402_s1 + $0x30] sm:$0xff]   ;;  %v2714_v21 = vld [vmem:[%s3402_s1 + $0x38] sm:$0xff]   ;;  %v2723_v24 = vld [vmem:[#allocation8] sm:$0xff]   ;;  %s3611_s1 = sld [smem:[#allocation26_spill]]  ;;  %s3042_s25 = smov [#allocation14]  }
  0xdc   : > { %v2721_v22 = vld [vmem:[#allocation7 + $0x30] sm:$0xff]   ;;  %v2722_v23 = vld [vmem:[#allocation7 + $0x38] sm:$0xff]   ;;  %v2724_v25 = vld [vmem:[#allocation8 + $0x8] sm:$0xff]   ;;  %p2955_p1 = pnand %p2954_p9, %p3616_p12 }
  0xdd   : > { %2431 = vmatpush3.bf16.msra.mxu1 %v2716_v8  ;;  %v2725_v26 = vld [vmem:[#allocation8 + $0x10] sm:$0xff]   ;;  %v2726_v27 = vld [vmem:[#allocation8 + $0x18] sm:$0xff]   ;;  %v2727_v28 = vld [vmem:[#allocation8 + $0x20] sm:$0xff]  }
  0xde   : > { %2401 = vmatpush3.bf16.msra.mxu0 %v2701_v2  ;;  %2432 = vmatprep.subr.bf16.mxu1 %v2717_v10  ;;  %v2728_v29 = vld [vmem:[#allocation8 + $0x28] sm:$0xff]   ;;  %v2120_v30 = vld [vmem:[%s3567_s2] ss:$0 sm:$0xff]  ;;  %p2956_p13 = pneg %p2955_p1 }
  0xdf   : > { %2402 = vmatprep.subr.bf16.mxu0 %v2702_v3 }
  0xe1   : > { %2433 = vmatpush3.bf16.msra.mxu1 %v2717_v10  ;;  %s3444_s20 = scalar_lea.vmem %s3611_s1, %s2119_s18  ;;  %s2252_s1 = sshll.u32 %s3141_s19, 10 }
  0xe2   : > { %2403 = vmatpush3.bf16.msra.mxu0 %v2702_v3  ;;  %2434 = vmatprep.subr.bf16.mxu1 %v2718_v12  ;;  %s1920_s19 = scalar_lea.sflag [#allocation4], %s3396_s14 }
  0xe3   : > { %2404 = vmatprep.subr.bf16.mxu0 %v2703_v5 }
  0xe5   : > { %2435 = vmatpush3.bf16.msra.mxu1 %v2718_v12 }
  0xe6   : > { %2405 = vmatpush3.bf16.msra.mxu0 %v2703_v5  ;;  %2436 = vmatprep.subr.bf16.mxu1 %v2719_v13 }
  0xe7   : > { %2406 = vmatprep.subr.bf16.mxu0 %v2704_v6 }
  0xe9   : > { %2437 = vmatpush3.bf16.msra.mxu1 %v2719_v13 }
  0xea   : > { %2407 = vmatpush3.bf16.msra.mxu0 %v2704_v6  ;;  %2438 = vmatprep.subr.bf16.mxu1 %v2720_v16 }
  0xeb   : > { %2408 = vmatprep.subr.bf16.mxu0 %v2705_v9 }
  0xed   : > { %2439 = vmatpush3.bf16.msra.mxu1 %v2720_v16 }
  0xee   : > { %2409 = vmatpush3.bf16.msra.mxu0 %v2705_v9  ;;  %2440 = vmatprep.subr.bf16.mxu1 %v2721_v22 }
  0xef   : > { %2410 = vmatprep.subr.bf16.mxu0 %v2706_v11 }
  0xf1   : > { %2441 = vmatpush3.bf16.msra.mxu1 %v2721_v22 }
  0xf2   : > { %2411 = vmatpush3.bf16.msra.mxu0 %v2706_v11  ;;  %2442 = vmatprep.subr.bf16.mxu1 %v2722_v23 }
  0xf3   : > { %2460 = vmatprep.subr.bf16.mxu0 %v2723_v24 }
  0xf5   : > { %2413 = vmatmul.mubr.bf16.vlgmr.msra.gmra.mrb[0].mxu0 %v2708_v14  ;;  %2443 = vmatpush3.bf16.msra.mxu1 %v2722_v23  ;;  %v2729_v23 = vld [vmem:[#allocation8 + $0x30] sm:$0xff]  }
  0xf6   : > { %2416 = vmatprep.mubr.bf16.mxu0 %v2709_v15  ;;  %2461 = vmatpush3.bf16.msra.mxu0 %v2723_v24  ;;  %v2730_v24 = vld [vmem:[#allocation8 + $0x38] sm:$0xff]  }
  0xf7   : > { %2462 = vmatprep.subr.bf16.mxu0 %v2724_v25 }
  0xfa   : > { %2463 = vmatpush3.bf16.msra.mxu0 %v2724_v25  ;;  %v2731_v25 = vld [vmem:[#allocation10] sm:$0xff]  }
  0xfb   : > { %2464 = vmatprep.subr.bf16.mxu0 %v2725_v26  ;;  %2492 = vmatprep.subr.bf16.mxu1 %v2731_v25 }
  0xfd   : > { %2417 = vmatmul.mubr.bf16.gmra.mrb[4].mxu0 %v2710_v17 }
  0xfe   : > { %2420 = vmatprep.mubr.bf16.mxu0 %v2711_v18  ;;  %2465 = vmatpush3.bf16.msra.mxu0 %v2725_v26  ;;  %v2732_v26 = vld [vmem:[#allocation10 + $0x8] sm:$0xff]  }
  0xff   : > { %2466 = vmatprep.subr.bf16.mxu0 %v2726_v27 }
 0x102   : > { %2467 = vmatpush3.bf16.msra.mxu0 %v2726_v27  ;;  %v2733_v27 = vld [vmem:[#allocation10 + $0x10] sm:$0xff]  }
 0x103   : > { %2468 = vmatprep.subr.bf16.mxu0 %v2727_v28 }
 0x105   : > { %2421 = vmatmul.mubr.bf16.gmra.mrb[8].mxu0 %v2712_v19 }
 0x106   : > { %2424 = vmatprep.mubr.bf16.mxu0 %v2713_v20  ;;  %2469 = vmatpush3.bf16.msra.mxu0 %v2727_v28  ;;  %v2734_v28 = vld [vmem:[#allocation10 + $0x18] sm:$0xff]  }
 0x107   : > { %2470 = vmatprep.subr.bf16.mxu0 %v2728_v29 }
 0x10a   : > { %2471 = vmatpush3.bf16.msra.mxu0 %v2728_v29  ;;  %v2735_v29 = vld [vmem:[#allocation10 + $0x20] sm:$0xff]  }
 0x10b   : > { %2472 = vmatprep.subr.bf16.mxu0 %v2729_v23 }
 0x10d   : > { %2425 = vmatmul.mubr.bf16.gmra.mrb[12].mxu0 %v2714_v21 }
 0x10e   : > { %2473 = vmatpush3.bf16.msra.mxu0 %v2729_v23 }
 0x10f   : > { %2474 = vmatprep.subr.bf16.mxu0 %v2730_v24 }
 0x112   : > { %2475 = vmatpush3.bf16.msra.mxu0 %v2730_v24  ;;  %v2737_v24 = vld [vmem:[#allocation10 + $0x30] sm:$0xff]  }
 0x1c8   : > { %v2414_v31 = vpop.f32.mrb[0].mxu0 }
 0x1c9   : > { %v768_v32 = vadd.f32 %v2414_v31, %v2120_v30  ;;  %v759_v33 = vpop.f32.mrb[1].mxu0  ;;  %v2137_v31 = vld [vmem:[%s3569_s4] ss:$0 sm:$0xff] }
 0x1ca   : > { %v760_v34 = vadd.f32 %v2120_v30, %v759_v33  ;;  %v2415_v35 = vpop.f32.mrb[2].mxu0 }
 0x1cb   : > { %v771_v36 = vadd.f32 %v2415_v35, %v2120_v30  ;;  %v762_v37 = vpop.f32.mrb[3].mxu0  ;;  %v824_v39 = vmax.f32 %v768_v32, 0.0 }
 0x1cc   : > { %v763_v38 = vadd.f32 %v2120_v30, %v762_v37  ;;  %v822_v41 = vmax.f32 %v760_v34, 0.0 }
 0x1cd   : > { %v825_v40 = vmax.f32 %v771_v36, 0.0 }
 0x1ce   : > { %v823_v42 = vmax.f32 %v763_v38, 0.0 }
 0x1cf   : > { %v839_v43 = vpack.c.bf16 %v825_v40, %v824_v39 }
 0x1d0   : > { %v2418_v44 = vpop.f32.mrb[4].mxu0  ;;  %v838_v45 = vpack.c.bf16 %v823_v42, %v822_v41 }
 0x1d1   : > { %v784_v46 = vadd.f32 %v2418_v44, %v2120_v30  ;;  %v775_v47 = vpop.f32.mrb[5].mxu0 }
 0x1d2   : > { %v776_v48 = vadd.f32 %v2120_v30, %v775_v47  ;;  %v2419_v49 = vpop.f32.mrb[6].mxu0  ;;  %2444 = vmatprep.mubr.bf16.mxu1 %v838_v45 }
 0x1d3   : > { %v787_v50 = vadd.f32 %v2419_v49, %v2120_v30  ;;  %v778_v51 = vpop.f32.mrb[7].mxu0  ;;  %2445 = vmatmul.mubr.bf16.vlgmr.msra.gmra.mrb[0].mxu1 %v839_v43  ;;  %v828_v53 = vmax.f32 %v784_v46, 0.0 }
 0x1d4   : > { %v779_v52 = vadd.f32 %v2120_v30, %v778_v51  ;;  %v826_v55 = vmax.f32 %v776_v48, 0.0  ;;  %2493 = vmatpush3.bf16.msra.mxu1 %v2731_v25  ;;  %v2738_v25 = vld [vmem:[#allocation10 + $0x38] sm:$0xff]  }
 0x1d5   : > { %v829_v54 = vmax.f32 %v787_v50, 0.0  ;;  %2494 = vmatprep.subr.bf16.mxu1 %v2732_v26 }
 0x1d6   : > { %v827_v56 = vmax.f32 %v779_v52, 0.0 }
 0x1d7   : > { %v841_v57 = vpack.c.bf16 %v829_v54, %v828_v53 }
 0x1d8   : > { %v840_v58 = vpack.c.bf16 %v827_v56, %v826_v55  ;;  %v2422_v59 = vpop.f32.mrb[8].mxu0  ;;  %2495 = vmatpush3.bf16.msra.mxu1 %v2732_v26  ;;  %v2739_v26 = vld [vmem:[#allocation11] sm:$0xff]  }
 0x1d9   : > { %v800_v60 = vadd.f32 %v2422_v59, %v2120_v30  ;;  %v791_v61 = vpop.f32.mrb[9].mxu0  ;;  %2496 = vmatprep.subr.bf16.mxu1 %v2733_v27  ;;  %2524 = vmatprep.subr.bf16.mxu0 %v2739_v26 }
 0x1da   : > { %v792_v62 = vadd.f32 %v2120_v30, %v791_v61  ;;  %v2423_v63 = vpop.f32.mrb[10].mxu0  ;;  %2448 = vmatprep.mubr.bf16.mxu1 %v840_v58 }
 0x1db   : > { %v803_v0 = vadd.f32 %v2423_v63, %v2120_v30  ;;  %v794_v1 = vpop.f32.mrb[11].mxu0  ;;  %2449 = vmatmul.mubr.bf16.gmra.mrb[4].mxu1 %v841_v57  ;;  %v832_v3 = vmax.f32 %v800_v60, 0.0 }
 0x1dc   : > { %v795_v2 = vadd.f32 %v2120_v30, %v794_v1  ;;  %v830_v5 = vmax.f32 %v792_v62, 0.0  ;;  %2497 = vmatpush3.bf16.msra.mxu1 %v2733_v27  ;;  %v2740_v27 = vld [vmem:[#allocation11 + $0x8] sm:$0xff]  }
 0x1dd   : > { %v833_v4 = vmax.f32 %v803_v0, 0.0  ;;  %2498 = vmatprep.subr.bf16.mxu1 %v2734_v28 }
 0x1de   : > { %v831_v6 = vmax.f32 %v795_v2, 0.0 }
 0x1df   : > { %v843_v7 = vpack.c.bf16 %v833_v4, %v832_v3 }
 0x1e0   : > { %v842_v8 = vpack.c.bf16 %v831_v6, %v830_v5  ;;  %v2426_v9 = vpop.f32.mrb[12].mxu0  ;;  %2499 = vmatpush3.bf16.msra.mxu1 %v2734_v28  ;;  %v2741_v28 = vld [vmem:[#allocation11 + $0x10] sm:$0xff]  }
 0x1e1   : > { %v816_v10 = vadd.f32 %v2426_v9, %v2120_v30  ;;  %v807_v11 = vpop.f32.mrb[13].mxu0  ;;  %2500 = vmatprep.subr.bf16.mxu1 %v2735_v29 }
 0x1e2   : > { %v808_v12 = vadd.f32 %v2120_v30, %v807_v11  ;;  %v2427_v13 = vpop.f32.mrb[14].mxu0  ;;  %2452 = vmatprep.mubr.bf16.mxu1 %v842_v8 }
 0x1e3   : > { %v819_v14 = vadd.f32 %v2427_v13, %v2120_v30  ;;  %v810_v15 = vpop.f32.mrb[15].mxu0  ;;  %2453 = vmatmul.mubr.bf16.gmra.mrb[8].mxu1 %v843_v7  ;;  %v836_v17 = vmax.f32 %v816_v10, 0.0 }
 0x1e4   : > { %v811_v16 = vadd.f32 %v2120_v30, %v810_v15  ;;  %v834_v19 = vmax.f32 %v808_v12, 0.0  ;;  %v2736_v30 = vld [vmem:[#allocation10 + $0x28] sm:$0xff]   ;;  %2501 = vmatpush3.bf16.msra.mxu1 %v2735_v29  ;;  %v2742_v29 = vld [vmem:[#allocation11 + $0x18] sm:$0xff]  }
 0x1e5   : > { %v837_v18 = vmax.f32 %v819_v14, 0.0  ;;  %2502 = vmatprep.subr.bf16.mxu1 %v2736_v30 }
 0x1e6   : > { %v835_v20 = vmax.f32 %v811_v16, 0.0 }
 0x1e7   : > { %v845_v21 = vpack.c.bf16 %v837_v18, %v836_v17 }
 0x1e8   : > { %v844_v22 = vpack.c.bf16 %v835_v20, %v834_v19  ;;  %2503 = vmatpush3.bf16.msra.mxu1 %v2736_v30  ;;  %v2743_v30 = vld [vmem:[#allocation11 + $0x20] sm:$0xff]  }
 0x1e9   : > { %2504 = vmatprep.subr.bf16.mxu1 %v2737_v24 }
 0x1ea   : > { %2456 = vmatprep.mubr.bf16.mxu1 %v844_v22 }
 0x1eb   : > { %2457 = vmatmul.mubr.bf16.gmra.mrb[12].mxu1 %v845_v21 }
 0x1ec   : > { %2505 = vmatpush3.bf16.msra.mxu1 %v2737_v24 }
 0x1ed   : > { %2506 = vmatprep.subr.bf16.mxu1 %v2738_v25 }
 0x1f0   : > { %2507 = vmatpush3.bf16.msra.mxu1 %v2738_v25  ;;  %v2745_v25 = vld [vmem:[#allocation11 + $0x30] sm:$0xff]  }
 0x2a6   : > { %v2446_v32 = vpop.f32.mrb[0].mxu1 }
 0x2a7   : > { %v960_v33 = vadd.f32 %v2446_v32, %v2137_v31  ;;  %v951_v34 = vpop.f32.mrb[1].mxu1  ;;  %v3438_v32 = vld [vmem:[%s3610_s22] ss:$0 sm:$0xff] }
 0x2a8   : > { %v952_v35 = vadd.f32 %v2137_v31, %v951_v34  ;;  %v2447_v36 = vpop.f32.mrb[2].mxu1 }
 0x2a9   : > { %v963_v37 = vadd.f32 %v2447_v36, %v2137_v31  ;;  %v954_v38 = vpop.f32.mrb[3].mxu1  ;;  %v1016_v40 = vmax.f32 %v960_v33, 0.0 }
 0x2aa   : > { %v955_v39 = vadd.f32 %v2137_v31, %v954_v38  ;;  %v1014_v42 = vmax.f32 %v952_v35, 0.0 }
 0x2ab   : > { %v1017_v41 = vmax.f32 %v963_v37, 0.0 }
 0x2ac   : > { %v1015_v43 = vmax.f32 %v955_v39, 0.0 }
 0x2ad   : > { %v1031_v44 = vpack.c.bf16 %v1017_v41, %v1016_v40 }
 0x2ae   : > { %v1030_v45 = vpack.c.bf16 %v1015_v43, %v1014_v42  ;;  %v2450_v46 = vpop.f32.mrb[4].mxu1 }
 0x2af   : > { %v976_v47 = vadd.f32 %v2450_v46, %v2137_v31  ;;  %v967_v48 = vpop.f32.mrb[5].mxu1 }
 0x2b0   : > { %v968_v49 = vadd.f32 %v2137_v31, %v967_v48  ;;  %v2451_v50 = vpop.f32.mrb[6].mxu1  ;;  %2476 = vmatprep.mubr.bf16.mxu0 %v1030_v45 }
 0x2b1   : > { %v979_v51 = vadd.f32 %v2451_v50, %v2137_v31  ;;  %v970_v52 = vpop.f32.mrb[7].mxu1  ;;  %2477 = vmatmul.mubr.bf16.vlgmr.msra.gmra.mrb[16].mxu0 %v1031_v44  ;;  %v1020_v54 = vmax.f32 %v976_v47, 0.0 }
 0x2b2   : > { %v971_v53 = vadd.f32 %v2137_v31, %v970_v52  ;;  %v1018_v56 = vmax.f32 %v968_v49, 0.0  ;;  %2525 = vmatpush3.bf16.msra.mxu0 %v2739_v26  ;;  %v2746_v26 = vld [vmem:[#allocation11 + $0x38] sm:$0xff]  }
 0x2b3   : > { %v1021_v55 = vmax.f32 %v979_v51, 0.0  ;;  %2526 = vmatprep.subr.bf16.mxu0 %v2740_v27 }
 0x2b4   : > { %v1019_v57 = vmax.f32 %v971_v53, 0.0 }
 0x2b5   : > { %v1033_v58 = vpack.c.bf16 %v1021_v55, %v1020_v54 }
 0x2b6   : > { %v1032_v59 = vpack.c.bf16 %v1019_v57, %v1018_v56  ;;  %v2454_v60 = vpop.f32.mrb[8].mxu1  ;;  %2527 = vmatpush3.bf16.msra.mxu0 %v2740_v27  ;;  %v2747_v27 = vld [vmem:[#allocation13] sm:$0xff]  }
 0x2b7   : > { %v992_v61 = vadd.f32 %v2454_v60, %v2137_v31  ;;  %v983_v62 = vpop.f32.mrb[9].mxu1  ;;  %2528 = vmatprep.subr.bf16.mxu0 %v2741_v28  ;;  %2556 = vmatprep.subr.bf16.mxu1 %v2747_v27 }
 0x2b8   : > { %v984_v63 = vadd.f32 %v2137_v31, %v983_v62  ;;  %v2455_v0 = vpop.f32.mrb[10].mxu1  ;;  %2480 = vmatprep.mubr.bf16.mxu0 %v1032_v59 }
 0x2b9   : > { %v995_v1 = vadd.f32 %v2455_v0, %v2137_v31  ;;  %v986_v2 = vpop.f32.mrb[11].mxu1  ;;  %2481 = vmatmul.mubr.bf16.gmra.mrb[20].mxu0 %v1033_v58  ;;  %v1024_v4 = vmax.f32 %v992_v61, 0.0 }
 0x2ba   : > { %v987_v3 = vadd.f32 %v2137_v31, %v986_v2  ;;  %v1022_v6 = vmax.f32 %v984_v63, 0.0  ;;  %2529 = vmatpush3.bf16.msra.mxu0 %v2741_v28  ;;  %v2748_v28 = vld [vmem:[#allocation13 + $0x8] sm:$0xff]  }
 0x2bb   : > { %v1025_v5 = vmax.f32 %v995_v1, 0.0  ;;  %2530 = vmatprep.subr.bf16.mxu0 %v2742_v29 }
 0x2bc   : > { %v1023_v7 = vmax.f32 %v987_v3, 0.0 }
 0x2bd   : > { %v1035_v8 = vpack.c.bf16 %v1025_v5, %v1024_v4 }
 0x2be   : > { %v1034_v9 = vpack.c.bf16 %v1023_v7, %v1022_v6  ;;  %v2458_v10 = vpop.f32.mrb[12].mxu1  ;;  %2531 = vmatpush3.bf16.msra.mxu0 %v2742_v29  ;;  %v2749_v29 = vld [vmem:[#allocation13 + $0x10] sm:$0xff]  }
 0x2bf   : > { %v1008_v11 = vadd.f32 %v2458_v10, %v2137_v31  ;;  %v999_v12 = vpop.f32.mrb[13].mxu1  ;;  %2532 = vmatprep.subr.bf16.mxu0 %v2743_v30 }
 0x2c0   : > { %v1000_v13 = vadd.f32 %v2137_v31, %v999_v12  ;;  %v2459_v14 = vpop.f32.mrb[14].mxu1  ;;  %2484 = vmatprep.mubr.bf16.mxu0 %v1034_v9 }
 0x2c1   : > { %v1011_v15 = vadd.f32 %v2459_v14, %v2137_v31  ;;  %v1002_v16 = vpop.f32.mrb[15].mxu1  ;;  %2485 = vmatmul.mubr.bf16.gmra.mrb[24].mxu0 %v1035_v8  ;;  %v1028_v18 = vmax.f32 %v1008_v11, 0.0 }
 0x2c2   : > { %v1003_v17 = vadd.f32 %v2137_v31, %v1002_v16  ;;  %v1026_v20 = vmax.f32 %v1000_v13, 0.0  ;;  %v2744_v31 = vld [vmem:[#allocation11 + $0x28] sm:$0xff]   ;;  %2533 = vmatpush3.bf16.msra.mxu0 %v2743_v30  ;;  %v2750_v30 = vld [vmem:[#allocation13 + $0x18] sm:$0xff]  }
 0x2c3   : > { %v1029_v19 = vmax.f32 %v1011_v15, 0.0  ;;  %2534 = vmatprep.subr.bf16.mxu0 %v2744_v31 }
 0x2c4   : > { %v1027_v21 = vmax.f32 %v1003_v17, 0.0 }
 0x2c5   : > { %v1037_v22 = vpack.c.bf16 %v1029_v19, %v1028_v18 }
 0x2c6   : > { %v1036_v23 = vpack.c.bf16 %v1027_v21, %v1026_v20  ;;  %2535 = vmatpush3.bf16.msra.mxu0 %v2744_v31  ;;  %v2751_v31 = vld [vmem:[#allocation13 + $0x20] sm:$0xff]  }
 0x2c7   : > { %2536 = vmatprep.subr.bf16.mxu0 %v2745_v25 }
 0x2c8   : > { %2488 = vmatprep.mubr.bf16.mxu0 %v1036_v23 }
 0x2c9   : > { %2489 = vmatmul.mubr.bf16.gmra.mrb[28].mxu0 %v1037_v22 }
 0x2ca   : > { %2537 = vmatpush3.bf16.msra.mxu0 %v2745_v25 }
 0x2cb   : > { %2538 = vmatprep.subr.bf16.mxu0 %v2746_v26 }
 0x2ce   : > { %2539 = vmatpush3.bf16.msra.mxu0 %v2746_v26  ;;  %v2753_v26 = vld [vmem:[#allocation13 + $0x30] sm:$0xff]  }
 0x384   : > { %v2478_v33 = vpop.f32.mrb[16].mxu0 }
 0x385   : > { %v1152_v34 = vadd.f32 %v2478_v33, %v3438_v32  ;;  %v1143_v35 = vpop.f32.mrb[17].mxu0  ;;  %v2171_v33 = vld [vmem:[%s3612_s6] ss:$0 sm:$0xff]  ;;  %s3519_s6 = scalar_lea.hbm %s3615_s12, %s2252_s1 }
 0x386   : > { %v1144_v36 = vadd.f32 %v3438_v32, %v1143_v35  ;;  %v2479_v37 = vpop.f32.mrb[18].mxu0 }
 0x387   : > { %v2222_v38 = vpack.c.bf16 %v1152_v34, %v1152_v34  ;;  %v1155_v39 = vadd.f32 %v2479_v37, %v3438_v32  ;;  %v1146_v40 = vpop.f32.mrb[19].mxu0 }
 0x388   : > { %v2220_v41 = vpack.c.bf16 %v1144_v36, %v1144_v36  ;;  %v1147_v42 = vadd.f32 %v3438_v32, %v1146_v40 }
 0x389   : > { %1273 = vst.msk [vmem:[%s3444_s20 + $0x8] sm:$0xf] %vm1270_vm0, %v2222_v38  ;;  %v1207_v43 = vpack.c.bf16 %v1155_v39, %v1152_v34  ;;  %v2223_v44 = vpack.c.bf16 %v1155_v39, %v1155_v39 }
 0x38a   : > { %1271 = vst.msk [vmem:[%s3444_s20] sm:$0xf] %vm1270_vm0, %v2220_v41  ;;  %v1206_v45 = vpack.c.bf16 %v1147_v42, %v1144_v36  ;;  %v2221_v46 = vpack.c.bf16 %v1147_v42, %v1147_v42 }
 0x38b   : > { %1274 = vst.msk [vmem:[%s3444_s20 + $0xc] sm:$0xf] %vm1270_vm0, %v2223_v44 }
 0x38c   : > { %1272 = vst.msk [vmem:[%s3444_s20 + $0x4] sm:$0xf] %vm1270_vm0, %v2221_v46  ;;  %v2482_v47 = vpop.f32.mrb[20].mxu0  ;;  %2508 = vmatprep.mubr.bf16.mxu1 %v1206_v45 }
 0x38d   : > { %v1168_v48 = vadd.f32 %v2482_v47, %v3438_v32  ;;  %v1159_v49 = vpop.f32.mrb[21].mxu0  ;;  %2509 = vmatmul.mubr.bf16.vlgmr.msra.gmra.mrb[16].mxu1 %v1207_v43 }
 0x38e   : > { %v1160_v50 = vadd.f32 %v3438_v32, %v1159_v49  ;;  %v2483_v51 = vpop.f32.mrb[22].mxu0  ;;  %2557 = vmatpush3.bf16.msra.mxu1 %v2747_v27  ;;  %v2754_v27 = vld [vmem:[#allocation13 + $0x38] sm:$0xff]  }
 0x38f   : > { %v2226_v52 = vpack.c.bf16 %v1168_v48, %v1168_v48  ;;  %v1171_v53 = vadd.f32 %v2483_v51, %v3438_v32  ;;  %v1162_v54 = vpop.f32.mrb[23].mxu0  ;;  %2558 = vmatprep.subr.bf16.mxu1 %v2748_v28 }
 0x390   : > { %v2224_v55 = vpack.c.bf16 %v1160_v50, %v1160_v50  ;;  %v1163_v56 = vadd.f32 %v3438_v32, %v1162_v54 }
 0x391   : > { %1277 = vst.msk [vmem:[%s3444_s20 + $0x18] sm:$0xf] %vm1270_vm0, %v2226_v52  ;;  %v1209_v57 = vpack.c.bf16 %v1171_v53, %v1168_v48  ;;  %v2227_v58 = vpack.c.bf16 %v1171_v53, %v1171_v53 }
 0x392   : > { %1275 = vst.msk [vmem:[%s3444_s20 + $0x10] sm:$0xf] %vm1270_vm0, %v2224_v55  ;;  %v1208_v59 = vpack.c.bf16 %v1163_v56, %v1160_v50  ;;  %v2225_v60 = vpack.c.bf16 %v1163_v56, %v1163_v56  ;;  %2559 = vmatpush3.bf16.msra.mxu1 %v2748_v28  ;;  %v2180_v28 = vld [vmem:[%s3613_s13] ss:$0 sm:$0xff]  ;;  %s2957_s13 = sshll.u32 %s3042_s25, 4  ;;  %s2958_s13 = int_to_ptr.vmem [resolvable:$false] %s2957_s13 }
 0x393   : > { %1278 = vst.msk [vmem:[%s3444_s20 + $0x1c] sm:$0xf] %vm1270_vm0, %v2227_v58  ;;  %2560 = vmatprep.subr.bf16.mxu1 %v2749_v29  ;;  %s2959_s22 = scalar_lea.vmem %s2958_s13, 2048  ;;  %p2960_p0 = scmp.lt.s32.totalorder %s3514_s23, %s2958_s13 }
 0x394   : > { %1276 = vst.msk [vmem:[%s3444_s20 + $0x14] sm:$0xf] %vm1270_vm0, %v2225_v60  ;;  %v2486_v61 = vpop.f32.mrb[24].mxu0  ;;  %2512 = vmatprep.mubr.bf16.mxu1 %v1208_v59  ;;  %p2961_p2 = scmp.lt.s32.totalorder %s2959_s22, %s2953_s10 }
 0x395   : > { %v1184_v62 = vadd.f32 %v2486_v61, %v3438_v32  ;;  %v1175_v63 = vpop.f32.mrb[25].mxu0  ;;  %2513 = vmatmul.mubr.bf16.gmra.mrb[20].mxu1 %v1209_v57 }
 0x396   : > { %v1176_v0 = vadd.f32 %v3438_v32, %v1175_v63  ;;  %v2487_v1 = vpop.f32.mrb[26].mxu0  ;;  %2561 = vmatpush3.bf16.msra.mxu1 %v2749_v29  ;;  %p2962_p8 = por %p2961_p2, %p2960_p0 }
 0x397   : > { %v2230_v2 = vpack.c.bf16 %v1184_v62, %v1184_v62  ;;  %v1187_v3 = vadd.f32 %v2487_v1, %v3438_v32  ;;  %v1178_v4 = vpop.f32.mrb[27].mxu0  ;;  %2562 = vmatprep.subr.bf16.mxu1 %v2750_v30 }
 0x398   : > { %v2228_v5 = vpack.c.bf16 %v1176_v0, %v1176_v0  ;;  %v1179_v6 = vadd.f32 %v3438_v32, %v1178_v4  ;;  %p2963_p4 = pnand %p2962_p8, %p2956_p13 }
 0x399   : > { %1281 = vst.msk [vmem:[%s3444_s20 + $0x28] sm:$0xf] %vm1270_vm0, %v2230_v2  ;;  %v1211_v7 = vpack.c.bf16 %v1187_v3, %v1184_v62  ;;  %v2231_v8 = vpack.c.bf16 %v1187_v3, %v1187_v3 }
 0x39a   : > { %1279 = vst.msk [vmem:[%s3444_s20 + $0x20] sm:$0xf] %vm1270_vm0, %v2228_v5  ;;  %v1210_v9 = vpack.c.bf16 %v1179_v6, %v1176_v0  ;;  %v2229_v10 = vpack.c.bf16 %v1179_v6, %v1179_v6  ;;  %2563 = vmatpush3.bf16.msra.mxu1 %v2750_v30 }
 0x39b   : > { %1282 = vst.msk [vmem:[%s3444_s20 + $0x2c] sm:$0xf] %vm1270_vm0, %v2231_v8  ;;  %2564 = vmatprep.subr.bf16.mxu1 %v2751_v31 }
 0x39c   : > { %1280 = vst.msk [vmem:[%s3444_s20 + $0x24] sm:$0xf] %vm1270_vm0, %v2229_v10  ;;  %v2490_v11 = vpop.f32.mrb[28].mxu0  ;;  %2516 = vmatprep.mubr.bf16.mxu1 %v1210_v9 }
 0x39d   : > { %v1200_v12 = vadd.f32 %v2490_v11, %v3438_v32  ;;  %v1191_v13 = vpop.f32.mrb[29].mxu0  ;;  %2517 = vmatmul.mubr.bf16.gmra.mrb[24].mxu1 %v1211_v7 }
 0x39e   : > { %v1192_v14 = vadd.f32 %v3438_v32, %v1191_v13  ;;  %v2491_v15 = vpop.f32.mrb[30].mxu0  ;;  %2565 = vmatpush3.bf16.msra.mxu1 %v2751_v31 }
 0x39f   : > { %v2234_v16 = vpack.c.bf16 %v1200_v12, %v1200_v12  ;;  %v1203_v17 = vadd.f32 %v2491_v15, %v3438_v32  ;;  %v1194_v18 = vpop.f32.mrb[31].mxu0 }
 0x3a0   : > { %v2232_v19 = vpack.c.bf16 %v1192_v14, %v1192_v14  ;;  %v1195_v20 = vadd.f32 %v3438_v32, %v1194_v18  ;;  %v2752_v32 = vld [vmem:[#allocation13 + $0x28] sm:$0xff]  }
 0x3a1   : > { %1285 = vst.msk [vmem:[%s3444_s20 + $0x38] sm:$0xf] %vm1270_vm0, %v2234_v16  ;;  %v1213_v21 = vpack.c.bf16 %v1203_v17, %v1200_v12  ;;  %v2235_v22 = vpack.c.bf16 %v1203_v17, %v1203_v17  ;;  %2566 = vmatprep.subr.bf16.mxu1 %v2752_v32 }
 0x3a2   : > { %1283 = vst.msk [vmem:[%s3444_s20 + $0x30] sm:$0xf] %vm1270_vm0, %v2232_v19  ;;  %v1212_v23 = vpack.c.bf16 %v1195_v20, %v1192_v14  ;;  %v2233_v24 = vpack.c.bf16 %v1195_v20, %v1195_v20  ;;  %2567 = vmatpush3.bf16.msra.mxu1 %v2752_v32 }
 0x3a3   : > { %1286 = vst.msk [vmem:[%s3444_s20 + $0x3c] sm:$0xf] %vm1270_vm0, %v2235_v22  ;;  %2568 = vmatprep.subr.bf16.mxu1 %v2753_v26 }
 0x3a4   : > { %1284 = vst.msk [vmem:[%s3444_s20 + $0x34] sm:$0xf] %vm1270_vm0, %v2233_v24  ;;  %2520 = vmatprep.mubr.bf16.mxu1 %v1212_v23 }
 0x3a5   : > { %2521 = vmatmul.mubr.bf16.gmra.mrb[28].mxu1 %v1213_v21 }
 0x3a6   : > { %2569 = vmatpush3.bf16.msra.mxu1 %v2753_v26 }
 0x3a7   : > { %2570 = vmatprep.subr.bf16.mxu1 %v2754_v27 }
 0x3aa   : > { %2571 = vmatpush3.bf16.msra.mxu1 %v2754_v27 }
 0x460   : > { %v2510_v34 = vpop.f32.mrb[16].mxu1 }
 0x461   : > { %v1401_v35 = vadd.f32 %v2510_v34, %v2171_v33  ;;  %v1392_v36 = vpop.f32.mrb[17].mxu1 }
 0x462   : > { %v1393_v37 = vadd.f32 %v2171_v33, %v1392_v36  ;;  %v2511_v38 = vpop.f32.mrb[18].mxu1 }
 0x463   : > { %v1404_v39 = vadd.f32 %v2511_v38, %v2171_v33  ;;  %v1395_v40 = vpop.f32.mrb[19].mxu1  ;;  %v1457_v42 = vmax.f32 %v1401_v35, 0.0 }
 0x464   : > { %v1396_v41 = vadd.f32 %v2171_v33, %v1395_v40  ;;  %v1455_v44 = vmax.f32 %v1393_v37, 0.0 }
 0x465   : > { %v1458_v43 = vmax.f32 %v1404_v39, 0.0 }
 0x466   : > { %v1456_v45 = vmax.f32 %v1396_v41, 0.0 }
 0x467   : > { %v1472_v46 = vpack.c.bf16 %v1458_v43, %v1457_v42 }
 0x468   : > { %v1471_v47 = vpack.c.bf16 %v1456_v45, %v1455_v44  ;;  %v2514_v48 = vpop.f32.mrb[20].mxu1 }
 0x469   : > { %v1417_v49 = vadd.f32 %v2514_v48, %v2171_v33  ;;  %v1408_v50 = vpop.f32.mrb[21].mxu1 }
 0x46a   : > { %v1409_v51 = vadd.f32 %v2171_v33, %v1408_v50  ;;  %v2515_v52 = vpop.f32.mrb[22].mxu1  ;;  %2540 = vmatprep.mubr.bf16.mxu0 %v1471_v47 }
 0x46b   : > { %v1420_v53 = vadd.f32 %v2515_v52, %v2171_v33  ;;  %v1411_v54 = vpop.f32.mrb[23].mxu1  ;;  %2541 = vmatmul.mubr.bf16.vlgmr.msra.gmra.mrb[32].mxu0 %v1472_v46  ;;  %v1461_v56 = vmax.f32 %v1417_v49, 0.0 }
 0x46c   : > { %v1412_v55 = vadd.f32 %v2171_v33, %v1411_v54  ;;  %v1459_v58 = vmax.f32 %v1409_v51, 0.0 }
 0x46d   : > { %v1462_v57 = vmax.f32 %v1420_v53, 0.0 }
 0x46e   : > { %v1460_v59 = vmax.f32 %v1412_v55, 0.0 }
 0x46f   : > { %v1474_v60 = vpack.c.bf16 %v1462_v57, %v1461_v56 }
 0x470   : > { %v1473_v61 = vpack.c.bf16 %v1460_v59, %v1459_v58  ;;  %v2518_v62 = vpop.f32.mrb[24].mxu1 }
 0x471   : > { %v1433_v63 = vadd.f32 %v2518_v62, %v2171_v33  ;;  %v1424_v0 = vpop.f32.mrb[25].mxu1 }
 0x472   : > { %v1425_v1 = vadd.f32 %v2171_v33, %v1424_v0  ;;  %v2519_v2 = vpop.f32.mrb[26].mxu1  ;;  %2544 = vmatprep.mubr.bf16.mxu0 %v1473_v61 }
 0x473   : > { %v1436_v3 = vadd.f32 %v2519_v2, %v2171_v33  ;;  %v1427_v4 = vpop.f32.mrb[27].mxu1  ;;  %2545 = vmatmul.mubr.bf16.gmra.mrb[36].mxu0 %v1474_v60  ;;  %v1465_v6 = vmax.f32 %v1433_v63, 0.0 }
 0x474   : > { %v1428_v5 = vadd.f32 %v2171_v33, %v1427_v4  ;;  %v1463_v8 = vmax.f32 %v1425_v1, 0.0 }
 0x475   : > { %v1466_v7 = vmax.f32 %v1436_v3, 0.0 }
 0x476   : > { %v1464_v9 = vmax.f32 %v1428_v5, 0.0 }
 0x477   : > { %v1476_v10 = vpack.c.bf16 %v1466_v7, %v1465_v6 }
 0x478   : > { %v1475_v11 = vpack.c.bf16 %v1464_v9, %v1463_v8  ;;  %v2522_v12 = vpop.f32.mrb[28].mxu1 }
 0x479   : > { %v1449_v13 = vadd.f32 %v2522_v12, %v2171_v33  ;;  %v1440_v14 = vpop.f32.mrb[29].mxu1 }
 0x47a   : > { %v1441_v15 = vadd.f32 %v2171_v33, %v1440_v14  ;;  %v2523_v16 = vpop.f32.mrb[30].mxu1  ;;  %2548 = vmatprep.mubr.bf16.mxu0 %v1475_v11 }
 0x47b   : > { %v1452_v17 = vadd.f32 %v2523_v16, %v2171_v33  ;;  %v1443_v18 = vpop.f32.mrb[31].mxu1  ;;  %2549 = vmatmul.mubr.bf16.gmra.mrb[40].mxu0 %v1476_v10  ;;  %v1469_v20 = vmax.f32 %v1449_v13, 0.0 }
 0x47c   : > { %v1444_v19 = vadd.f32 %v2171_v33, %v1443_v18  ;;  %v1467_v22 = vmax.f32 %v1441_v15, 0.0 }
 0x47d   : > { %v1470_v21 = vmax.f32 %v1452_v17, 0.0 }
 0x47e   : > { %v1468_v23 = vmax.f32 %v1444_v19, 0.0 }
 0x47f   : > { %v1478_v24 = vpack.c.bf16 %v1470_v21, %v1469_v20 }
 0x480   : > { %v1477_v25 = vpack.c.bf16 %v1468_v23, %v1467_v22  ;;  %v2189_v22 = vld [vmem:[%s3614_s27] ss:$0 sm:$0xff] }
 0x482   : > { %2552 = vmatprep.mubr.bf16.mxu0 %v1477_v25 }
 0x483   : > { %2553 = vmatmul.mubr.bf16.gmra.mrb[44].mxu0 %v1478_v24 }
 0x53e   : > { %v2542_v29 = vpop.f32.mrb[32].mxu0 }
 0x53f   : > { %v1593_v30 = vadd.f32 %v2542_v29, %v2180_v28  ;;  %v1584_v31 = vpop.f32.mrb[33].mxu0 }
 0x540   : > { %v1585_v32 = vadd.f32 %v2180_v28, %v1584_v31  ;;  %v2543_v33 = vpop.f32.mrb[34].mxu0 }
 0x541   : > { %v1596_v34 = vadd.f32 %v2543_v33, %v2180_v28  ;;  %v1587_v35 = vpop.f32.mrb[35].mxu0  ;;  %v1649_v37 = vmax.f32 %v1593_v30, 0.0 }
 0x542   : > { %v1588_v36 = vadd.f32 %v2180_v28, %v1587_v35  ;;  %v1647_v39 = vmax.f32 %v1585_v32, 0.0 }
 0x543   : > { %v1650_v38 = vmax.f32 %v1596_v34, 0.0 }
 0x544   : > { %v1648_v40 = vmax.f32 %v1588_v36, 0.0 }
 0x545   : > { %v1664_v41 = vpack.c.bf16 %v1650_v38, %v1649_v37 }
 0x546   : > { %v1663_v42 = vpack.c.bf16 %v1648_v40, %v1647_v39  ;;  %v2546_v43 = vpop.f32.mrb[36].mxu0 }
 0x547   : > { %v1609_v44 = vadd.f32 %v2546_v43, %v2180_v28  ;;  %v1600_v45 = vpop.f32.mrb[37].mxu0 }
 0x548   : > { %v1601_v46 = vadd.f32 %v2180_v28, %v1600_v45  ;;  %v2547_v47 = vpop.f32.mrb[38].mxu0  ;;  %2572 = vmatprep.mubr.bf16.mxu1 %v1663_v42 }
 0x549   : > { %v1612_v48 = vadd.f32 %v2547_v47, %v2180_v28  ;;  %v1603_v49 = vpop.f32.mrb[39].mxu0  ;;  %2573 = vmatmul.mubr.bf16.vlgmr.msra.gmra.mrb[32].mxu1 %v1664_v41  ;;  %v1653_v51 = vmax.f32 %v1609_v44, 0.0 }
 0x54a   : > { %v1604_v50 = vadd.f32 %v2180_v28, %v1603_v49  ;;  %v1651_v53 = vmax.f32 %v1601_v46, 0.0 }
 0x54b   : > { %v1654_v52 = vmax.f32 %v1612_v48, 0.0 }
 0x54c   : > { %v1652_v54 = vmax.f32 %v1604_v50, 0.0 }
 0x54d   : > { %v1666_v55 = vpack.c.bf16 %v1654_v52, %v1653_v51 }
 0x54e   : > { %v1665_v56 = vpack.c.bf16 %v1652_v54, %v1651_v53  ;;  %v2550_v57 = vpop.f32.mrb[40].mxu0 }
 0x54f   : > { %v1625_v58 = vadd.f32 %v2550_v57, %v2180_v28  ;;  %v1616_v59 = vpop.f32.mrb[41].mxu0 }
 0x550   : > { %v1617_v60 = vadd.f32 %v2180_v28, %v1616_v59  ;;  %v2551_v61 = vpop.f32.mrb[42].mxu0  ;;  %2576 = vmatprep.mubr.bf16.mxu1 %v1665_v56 }
 0x551   : > { %v1628_v62 = vadd.f32 %v2551_v61, %v2180_v28  ;;  %v1619_v63 = vpop.f32.mrb[43].mxu0  ;;  %2577 = vmatmul.mubr.bf16.gmra.mrb[36].mxu1 %v1666_v55  ;;  %v1657_v1 = vmax.f32 %v1625_v58, 0.0 }
 0x552   : > { %v1620_v0 = vadd.f32 %v2180_v28, %v1619_v63  ;;  %v1655_v3 = vmax.f32 %v1617_v60, 0.0 }
 0x553   : > { %v1658_v2 = vmax.f32 %v1628_v62, 0.0 }
 0x554   : > { %v1656_v4 = vmax.f32 %v1620_v0, 0.0 }
 0x555   : > { %v1668_v5 = vpack.c.bf16 %v1658_v2, %v1657_v1 }
 0x556   : > { %v1667_v6 = vpack.c.bf16 %v1656_v4, %v1655_v3  ;;  %v2554_v7 = vpop.f32.mrb[44].mxu0 }
 0x557   : > { %v1641_v8 = vadd.f32 %v2554_v7, %v2180_v28  ;;  %v1632_v9 = vpop.f32.mrb[45].mxu0 }
 0x558   : > { %v1633_v10 = vadd.f32 %v2180_v28, %v1632_v9  ;;  %v2555_v11 = vpop.f32.mrb[46].mxu0  ;;  %2580 = vmatprep.mubr.bf16.mxu1 %v1667_v6 }
 0x559   : > { %v1644_v12 = vadd.f32 %v2555_v11, %v2180_v28  ;;  %v1635_v13 = vpop.f32.mrb[47].mxu0  ;;  %2581 = vmatmul.mubr.bf16.gmra.mrb[40].mxu1 %v1668_v5  ;;  %v1661_v15 = vmax.f32 %v1641_v8, 0.0 }
 0x55a   : > { %v1636_v14 = vadd.f32 %v2180_v28, %v1635_v13  ;;  %v1659_v17 = vmax.f32 %v1633_v10, 0.0 }
 0x55b   : > { %v1662_v16 = vmax.f32 %v1644_v12, 0.0 }
 0x55c   : > { %v1660_v18 = vmax.f32 %v1636_v14, 0.0 }
 0x55d   : > { %v1670_v19 = vpack.c.bf16 %v1662_v16, %v1661_v15 }
 0x55e   : > { %v1669_v20 = vpack.c.bf16 %v1660_v18, %v1659_v17 }
 0x560   : > { %2584 = vmatprep.mubr.bf16.mxu1 %v1669_v20 }
 0x561   : > { %2585 = vmatmul.mubr.bf16.gmra.mrb[44].mxu1 %v1670_v19 }
 0x61c   : > { %v2574_v21 = vpop.f32.mrb[32].mxu1 }
 0x61d   : > { %v1776_v23 = vpop.f32.mrb[33].mxu1  ;;  %v1785_v25 = vadd.f32 %v2574_v21, %v2189_v22 }
 0x61e   : > { %v2575_v24 = vpop.f32.mrb[34].mxu1  ;;  %v1777_v28 = vadd.f32 %v2189_v22, %v1776_v23 }
 0x61f   : > { %v1788_v26 = vadd.f32 %v2575_v24, %v2189_v22  ;;  %v1779_v27 = vpop.f32.mrb[35].mxu1 }
 0x620   : > { %v1780_v29 = vadd.f32 %v2189_v22, %v1779_v27 }
 0x621   : > { %v2261_v30 = vpack.c.bf16 %v1788_v26, %v1785_v25 }
 0x622   : > { %v2256_v31 = vpack.c.bf16 %v1780_v29, %v1777_v28 }
 0x623   : > { %2293 = vst [vmem:[%s3504_s28 + $0x8] sm:$0xff] %v2261_v30  }
 0x624   : > { %2257 = vst [vmem:[%s3504_s28] sm:$0xff] %v2256_v31   ;;  %v2578_v32 = vpop.f32.mrb[36].mxu1 }
 0x625   : > { %v1792_v33 = vpop.f32.mrb[37].mxu1  ;;  %v1801_v35 = vadd.f32 %v2578_v32, %v2189_v22 }
 0x626   : > { %v2579_v34 = vpop.f32.mrb[38].mxu1  ;;  %v1793_v38 = vadd.f32 %v2189_v22, %v1792_v33 }
 0x627   : > { %v1804_v36 = vadd.f32 %v2579_v34, %v2189_v22  ;;  %v1795_v37 = vpop.f32.mrb[39].mxu1 }
 0x628   : > { %v1796_v39 = vadd.f32 %v2189_v22, %v1795_v37 }
 0x629   : > { %v2271_v40 = vpack.c.bf16 %v1804_v36, %v1801_v35 }
 0x62a   : > { %v2266_v41 = vpack.c.bf16 %v1796_v39, %v1793_v38 }
 0x62b   : > { %2295 = vst [vmem:[%s3504_s28 + $0x18] sm:$0xff] %v2271_v40  }
 0x62c   : > { %2294 = vst [vmem:[%s3504_s28 + $0x10] sm:$0xff] %v2266_v41   ;;  %v2582_v42 = vpop.f32.mrb[40].mxu1 }
 0x62d   : > { %v1808_v43 = vpop.f32.mrb[41].mxu1  ;;  %v1817_v45 = vadd.f32 %v2582_v42, %v2189_v22 }
 0x62e   : > { %v2583_v44 = vpop.f32.mrb[42].mxu1  ;;  %v1809_v48 = vadd.f32 %v2189_v22, %v1808_v43 }
 0x62f   : > { %v1820_v46 = vadd.f32 %v2583_v44, %v2189_v22  ;;  %v1811_v47 = vpop.f32.mrb[43].mxu1 }
 0x630   : > { %v1812_v49 = vadd.f32 %v2189_v22, %v1811_v47 }
 0x631   : > { %v2281_v50 = vpack.c.bf16 %v1820_v46, %v1817_v45 }
 0x632   : > { %v2276_v51 = vpack.c.bf16 %v1812_v49, %v1809_v48 }
 0x633   : > { %2297 = vst [vmem:[%s3504_s28 + $0x28] sm:$0xff] %v2281_v50  }
 0x634   : > { %2296 = vst [vmem:[%s3504_s28 + $0x20] sm:$0xff] %v2276_v51   ;;  %v2586_v52 = vpop.f32.mrb[44].mxu1 }
 0x635   : > { %v1824_v53 = vpop.f32.mrb[45].mxu1  ;;  %v1833_v55 = vadd.f32 %v2586_v52, %v2189_v22 }
 0x636   : > { %v2587_v54 = vpop.f32.mrb[46].mxu1  ;;  %v1825_v58 = vadd.f32 %v2189_v22, %v1824_v53 }
 0x637   : > { %v1836_v56 = vadd.f32 %v2587_v54, %v2189_v22  ;;  %v1827_v57 = vpop.f32.mrb[47].mxu1 }
 0x638   : > { %v1828_v59 = vadd.f32 %v2189_v22, %v1827_v57 }
 0x639   : > { %v2291_v60 = vpack.c.bf16 %v1836_v56, %v1833_v55 }
 0x63a   : > { %v2286_v61 = vpack.c.bf16 %v1828_v59, %v1825_v58 }
 0x63b   : > { %2299 = vst [vmem:[%s3504_s28 + $0x38] sm:$0xff] %v2291_v60  }
 0x63c   : > { %2298 = vst [vmem:[%s3504_s28 + $0x30] sm:$0xff] %v2286_v61  }
 0x63d   : > { %2966 = shalt.err (!%p2963_p4)
}
 0x63e   : > { %s2967_s18 = scalar_lea.hbm %s3519_s6, 1024  ;;  %s2971_s1 = scalar_lea.hbm %s3615_s12, 2048 }
 0x63f   : > { %p2968_p10 = scmp.ne.s32.totalorder %s3519_s6, %s2967_s18  ;;  %p2972_p5 = scmp.lt.u32.totalorder %s3519_s6, %s3615_s12 }
 0x640   : > { %p2973_p7 = scmp.lt.u32.totalorder %s2971_s1, %s2967_s18  ;;  %p2975_p9 = scmp.lt.u32.totalorder %s2967_s18, %s3519_s6 }
 0x641   : > { %p2969_p11 = pnand %p2968_p10, %p3616_p12 }
 0x642   : > { %p2974_p6 = por %p2973_p7, %p2972_p5 }
 0x643   : > { %p2970_p3 = pneg %p2969_p11 }
 0x644   : > { %p2976_p1 = por %p2975_p9, %p2974_p6 }
 0x646   : > { %p2977_p13 = pnand %p2976_p1, %p2970_p3 }
 0x648   : > { %2980 = shalt.err (!%p2977_p13)
}
 0x649   : > { %s3043_s10 = smov 64   ;;  %s3044_s25 = smov 4  }
 0x64a   : > { %2614 = dma.vmem_to_hbm [thread:$0]  (%p3616_p12), %s3514_s23, 1024, %s3519_s6, %s1920_s19, %s3043_s10, %s3043_s10, %s3044_s25  }
 0x64b PF: > { %s1957_s13 = sand.u32 1, %s3019_s29   ;;  %p3617_p0 = scmp.ne.s32.totalorder %s3600_s24, 0 }
 0x64c   : > { %p3618_p2 = scmp.ge.s32.totalorder %s3031_s16, 2  ;;  %s1958_s22 = scalar_lea.sflag [#allocation4], %s1957_s13 }
 0x64e   : > { %p2640_p8 = pnand %p3618_p2, %p3617_p0 }
 0x650   : > { %3014 = dma.done.wait (!%p2640_p8), %s1958_s22, 1024  }
 0x651   : > { %3016 = vsyncadd (!%p2640_p8), %s1958_s22, 4294966272  ;;  %p31_p4 = scmp.ge.s32.totalorder %s3314_s21, 4   ;;  %s3619_s29 = smov %s3023_s30 }
 0x652   : > { %s3620_s30 = smov %s3027_s15  ;;  %s3621_s15 = smov %s3325_s8 }
 0x653   : > { %s3622_s16 = smov %s3314_s21  ;;  %33 = sbr.rel (!%p31_p4) target bundleno = 16 (0x10), region = 153 }
 0x65a   :  { %1971 = vsyncpa [#allocation3], 1 }
 0x65b   :  { %1973 = vsyncpa [#allocation3 + $0x1], 1 }
 0x65c   :  { %1974 = vsyncpa [#allocation6], 1 }
 0x65d   :  { %1975 = vsyncpa [#allocation9], 1 }
 0x65e   :  { %1976 = vsyncpa [#allocation12], 1 }
 0x65f   :  { %1977 = vsyncpa [#allocation4], 1 }
 0x660   :  { %1979 = vsyncpa [#allocation4 + $0x1], 1 }

</bundles_post_ra>
